<compile_context>
chip_gen: v7x
topology: tpu7x:2x2x1
jax: 0.10.0
libtpu: 0.0.40
codegen_flags: <defaults>
</compile_context>

<pallas_src>
import jax
import jax.numpy as jnp
from jax.experimental import pallas as pl
from jax.experimental.pallas import tpu as pltpu

_VMEM = pl.BlockSpec(memory_space=pltpu.MemorySpace.VMEM)
_LANE = 128


def _round_up(x, m):
    return ((x + m - 1) // m) * m


# -----------------------------------------------------------------------------
# In-kernel helper: torch.median (lower median) of the multiset formed by the
# `sel_per_row` smallest values of every row of `d`, without sort or top-k.
#
#   cnt_S(t)  = sum_r min(sel, #{c : d[r,c] <= t})     (selected values <= t)
#   median    = min{ t in d : cnt_S(t) >= m+1 },  m = (N*sel - 1)//2
#
# Candidates t range over all matrix entries; this provably yields the exact
# order statistic (ties included).  O(N^3) VPU compares — fine for the small
# clinical cohort sizes this model runs at.
# -----------------------------------------------------------------------------
def _median_of_row_topk(d, sel_per_row):
    n = d.shape[0]
    f32 = jnp.float32
    # Lane-dense (1, n*n) candidate vector (row-major flatten via lane concat).
    cand = jnp.concatenate([d[i:i + 1, :] for i in range(n)], axis=1)
    cnt_row = jnp.zeros((n, n * n), f32)
    for c in range(n):  # per-row "how many entries <= candidate" counts
        cnt_row = cnt_row + (d[:, c:c + 1] <= cand).astype(f32)
    cnt_sel = jnp.sum(jnp.minimum(cnt_row, float(sel_per_row)),
                      axis=0, keepdims=True)               # (1, n*n)
    m = (n * sel_per_row - 1) // 2                          # lower median index
    med = jnp.min(jnp.where(cnt_sel >= float(m + 1), cand, jnp.inf),
                  axis=1, keepdims=True)                    # (1, 1)
    return med


# -----------------------------------------------------------------------------
# The single fused kernel: distances -> H -> HyConv stack -> concat-free fc
# -----------------------------------------------------------------------------
def _fused_call(packed, x_ct, x_wsi, x_cli, k_ct, k_wsi):
    n, c_in = x_ct.shape
    c_wsi = x_wsi.shape[1]
    c1 = 512                       # forward() hard-codes x_ct[:, :512] / [512:]
    c2 = c_in - c1
    assert c2 > 0, "in_channels must exceed 512 (PyTorch forward hard-codes the split)"
    kw = max(c_wsi, c1, c2)        # common K width for the stacked Gram

    thetas = packed["thetas"]      # thetas[0] = [theta0 | w_res] (c_in, h0+t) bf16
    biases = packed["biases"]      # list of (1, h_i) f32
    w_x = packed["w_x"]            # (h_last, out_w) f32, zero-padded columns
    w_cli = packed["w_cli"]        # (3, out_w) f32: rows = [cli0; cli1; fc_bias]
    nl = len(biases)
    h0 = biases[0].shape[1]
    t = thetas[0].shape[1] - h0    # n_target
    out_w = w_x.shape[1]
    n3 = 3 * n
    f32 = jnp.float32

    sel_ct, sel_wsi = 2 * k_ct, 2 * k_wsi
    assert sel_ct <= n and sel_wsi <= n, "K*2 must be <= N (torch.topk constraint)"

    def kernel(*refs):
        o_ref = refs[-1]
        xct_ref, xwsi_ref, xcli_ref = refs[0], refs[1], refs[2]
        lrefs = refs[3:3 + 2 * nl]
        wx_ref, wcli_ref = refs[3 + 2 * nl], refs[4 + 2 * nl]

        x = xct_ref[...]                                    # (n, c_in) f32
        xw = xwsi_ref[...]                                  # (n, c_wsi) f32

        # ---- 1. batched Gram: one MXU chain for all three distance sources.
        # TODO(synk): pairwise_euclidean_distance_2d was not provided with the
        # PyTorch source; assuming the standard full Euclidean distance matrix.
        def pad_k(a):
            k = a.shape[1]
            if k == kw:
                return a
            return jnp.concatenate([a, jnp.zeros((n, kw - k), f32)], axis=1)

        xs = jnp.concatenate([pad_k(xw), pad_k(x[:, :c1]), pad_k(x[:, c1:])],
                             axis=0)                        # (3n, kw) f32
        gram = jax.lax.dot_general(xs, xs, (((1,), (1,)), ((), ())),
                                   preferred_element_type=f32)      # (3n, 3n)

        # Squared norms from the Gram diagonal (exact; one hoisted eye mask;
        # no transpose needed for the row version).
        eye = (jax.lax.broadcasted_iota(jnp.int32, (n3, n3), 0)
               == jax.lax.broadcasted_iota(jnp.int32, (n3, n3), 1))
        gdiag = jnp.where(eye, gram, 0.0)
        sq_col = jnp.sum(gdiag, axis=1, keepdims=True)      # (3n, 1)
        sq_row = jnp.sum(gdiag, axis=0, keepdims=True)      # (1, 3n)

        def norm_dist(i):
            s = i * n
            g = gram[s:s + n, s:s + n]
            d2 = sq_col[s:s + n, :] + sq_row[:, s:s + n] - 2.0 * g
            d = jnp.sqrt(jnp.maximum(d2, 0.0))              # diag exactly 0
            mx = jnp.max(jnp.max(d, axis=1, keepdims=True), axis=0,
                         keepdims=True)
            inv = jnp.where(mx > 0.0, 1.0 / jnp.maximum(mx, 1e-30), 0.0)
            return d * inv                                  # norm_dis, f32

        nd_wsi, nd_ct1, nd_ct2 = norm_dist(0), norm_dist(1), norm_dist(2)

        # ---- 2. H = OR of the three thresholded graphs (in-kernel medians).
        h_any = ((nd_ct1 < _median_of_row_topk(nd_ct1, sel_ct))
                 | (nd_ct2 < _median_of_row_topk(nd_ct2, sel_ct))
                 | (nd_wsi < _median_of_row_topk(nd_wsi, sel_wsi)))
        Hm = h_any.astype(f32)                              # (n, n) 0/1

        # ---- 3. propagation operator G = Dv·H·De·Hᵀ (built once, exact div;
        # isolated vertices/edges guarded with 0 instead of torch's inf/nan).
        row_deg = jnp.sum(Hm, axis=1, keepdims=True)
        col_deg = jnp.sum(Hm, axis=0, keepdims=True)
        dv = jnp.where(row_deg > 0.0, 1.0 / jnp.maximum(row_deg, 1.0), 0.0)
        de = jnp.where(col_deg > 0.0, 1.0 / jnp.maximum(col_deg, 1.0), 0.0)
        G = jax.lax.dot_general(dv * Hm, Hm * de, (((1,), (1,)), ((), ())),
                                preferred_element_type=f32)          # (n, n)

        # ---- 4. HyConv stack; layer 0's matmul also produces the fc residual
        # slab (theta0 and w_res share K=c_in -> single bf16 MXU chain).
        x_bf = x.astype(jnp.bfloat16)                       # in-kernel cast
        z = jnp.dot(x_bf, lrefs[0][...], preferred_element_type=f32)  # (n, h0+t)
        res_part = z[:, h0:]                                # (n, t) = x_ct @ w_res
        h = jnp.dot(G, z[:, :h0] + lrefs[1][...], preferred_element_type=f32)
        for li in range(1, nl):
            y = (jnp.dot(h, lrefs[2 * li][...], preferred_element_type=f32)
                 + lrefs[2 * li + 1][...])
            h = jnp.dot(G, y, preferred_element_type=f32)
        # nn.Dropout layers are identity at inference time.

        # ---- 5. fc(cat(h, res, x_cli)) without materializing the concat; the
        # fc bias is folded into the clinical slab via a "ones" column.
        cli_aug = jnp.concatenate([xcli_ref[...], jnp.ones((n, 1), f32)],
                                  axis=1)                   # (n, 3)
        out = (jnp.dot(h, wx_ref[...], preferred_element_type=f32)
               + jnp.dot(cli_aug, wcli_ref[...], preferred_element_type=f32))
        if t == out_w:
            out = out + res_part
        else:
            out = out + jnp.concatenate(
                [res_part, jnp.zeros((n, out_w - t), f32)], axis=1)
        o_ref[...] = out                 # single unmasked lane-dense store

    layer_args = []
    for i in range(nl):
        layer_args += [thetas[i], biases[i]]
    inputs = [x_ct, x_wsi, x_cli] + layer_args + [w_x, w_cli]

    out = pl.pallas_call(
        kernel,
        out_shape=jax.ShapeDtypeStruct((n, out_w), jnp.float32),
        in_specs=[_VMEM] * len(inputs),
        out_specs=_VMEM,
    )(*inputs)
    return out, t


# -----------------------------------------------------------------------------
# Parameter init (deterministic, mirrors reset_parameters / _init_vit_weights)
# -----------------------------------------------------------------------------
def init_params(key, in_channels, linear_hiddens, n_target):
    params = {"hyconvs": []}
    _in = in_channels
    for h in linear_hiddens:
        key, k1 = jax.random.split(key)
        bound = (6.0 / (_in + h)) ** 0.5                    # xavier_uniform_
        theta = jax.random.uniform(k1, (_in, h), jnp.float32, -bound, bound)
        params["hyconvs"].append(
            {"theta": theta, "bias": jnp.zeros((h,), jnp.float32)})
        _in = h
    d_fc = in_channels + linear_hiddens[-1] + 2
    key, k2 = jax.random.split(key)
    # trunc_normal_(std=0.01) for the fc layer, zero bias
    w = jax.random.truncated_normal(k2, -2.0, 2.0, (n_target, d_fc),
                                    jnp.float32) * 0.01
    params["fc_w"] = w
    params["fc_b"] = jnp.zeros((n_target,), jnp.float32)
    return params


# -----------------------------------------------------------------------------
# One-time repack into the kernel layout.  Call OUTSIDE jit so no per-forward
# convert/pad ops are emitted (review: the wrapper-cast anti-pattern).
# -----------------------------------------------------------------------------
def pack_params(params, in_channels, linear_hiddens, n_target):
    h_last = linear_hiddens[-1]
    t = n_target
    out_w = _round_up(t, _LANE)

    w_t = params["fc_w"].T                                  # (h_last + C + 2, t)
    w_x = w_t[:h_last]
    w_res = w_t[h_last:h_last + in_channels]
    w_cli = w_t[h_last + in_channels:]
    fc_b = params["fc_b"].reshape(1, t)

    def pad_cols(a):
        return jnp.pad(a, ((0, 0), (0, out_w - t)))

    # theta0 fused with the fc residual slab: one persistent-bf16 operand that
    # drives a single K=in_channels MXU chain in the kernel.
    thetas = [jnp.concatenate([params["hyconvs"][0]["theta"], w_res],
                              axis=1).astype(jnp.bfloat16)]
    biases = [params["hyconvs"][0]["bias"].reshape(1, -1)]
    for lyr in params["hyconvs"][1:]:
        thetas.append(lyr["theta"])
        biases.append(lyr["bias"].reshape(1, -1))

    return {
        "thetas": thetas,
        "biases": biases,
        "w_x": pad_cols(w_x),                               # (h_last, out_w)
        "w_cli": pad_cols(jnp.concatenate([w_cli, fc_b], axis=0)),  # (3, out_w)
    }


# -----------------------------------------------------------------------------
# Model forward (single Pallas launch)
# -----------------------------------------------------------------------------
def model_forward(packed, x_ct, x_wsi, x_cli, k_nearest, k_nearest_wsi):
    out_pad, t = _fused_call(packed, x_ct, x_wsi, x_cli, k_nearest,
                             k_nearest_wsi)
    out = out_pad[:, :t]
    return out, out


# -----------------------------------------------------------------------------
if __name__ == "__main__":
    key = jax.random.PRNGKey(0)

    N = 8                      # number of samples / hypergraph vertices
    in_channels = 1024         # forward slices x_ct[:, :512] / x_ct[:, 512:]
    wsi_dim = 256
    linear_hiddens = [64, 32]
    n_target = 1
    k_nearest = 2
    k_nearest_wsi = 2

    kx, kw, kc, kp = jax.random.split(key, 4)
    x_ct = jax.random.normal(kx, (N, in_channels), jnp.float32)
    x_wsi = jax.random.normal(kw, (N, wsi_dim), jnp.float32)
    x_cli = jax.random.normal(kc, (N, 2), jnp.float32)

    params = init_params(kp, in_channels, linear_hiddens, n_target)
    packed = pack_params(params, in_channels, linear_hiddens, n_target)

    fwd = jax.jit(model_forward, static_argnums=(4, 5))
    out, out_ft = fwd(packed, x_ct, x_wsi, x_cli, k_nearest, k_nearest_wsi)
    jax.block_until_ready(out)
    assert out.shape == (N, n_target)
    print("KERNEL_OK")
</pallas_src>

<mosaic_0001>
module attributes {stable_mosaic.version = 11 : i64} {
  func.func @kernel(%arg0: memref<8x1024xf32, #tpu.memory_space<vmem>>, %arg1: memref<8x256xf32, #tpu.memory_space<vmem>>, %arg2: memref<8x2xf32, #tpu.memory_space<vmem>>, %arg3: memref<1024x65xbf16, #tpu.memory_space<vmem>>, %arg4: memref<1x64xf32, #tpu.memory_space<vmem>>, %arg5: memref<64x32xf32, #tpu.memory_space<vmem>>, %arg6: memref<1x32xf32, #tpu.memory_space<vmem>>, %arg7: memref<32x128xf32, #tpu.memory_space<vmem>>, %arg8: memref<3x128xf32, #tpu.memory_space<vmem>>, %arg9: memref<8x128xf32, #tpu.memory_space<vmem>>) attributes {dimension_semantics = [], scalar_prefetch = 0 : i64, scratch_operands = 0 : i64, tpu.core_type = #tpu.core_type<tc>} {
    %c0 = arith.constant 0 : index
    %c0_0 = arith.constant 0 : index
    %0 = vector.load %arg0[%c0, %c0_0] : memref<8x1024xf32, #tpu.memory_space<vmem>>, vector<8x1024xf32>
    %c0_1 = arith.constant 0 : index
    %c0_2 = arith.constant 0 : index
    %1 = vector.load %arg1[%c0_1, %c0_2] : memref<8x256xf32, #tpu.memory_space<vmem>>, vector<8x256xf32>
    %cst = arith.constant 0.000000e+00 : f32
    %2 = vector.broadcast %cst : f32 to vector<8x256xf32>
    %3 = tpu.concatenate %1, %2 in 1 : vector<8x256xf32>, vector<8x256xf32> -> vector<8x512xf32>
    %4 = vector.extract_strided_slice %0 {offsets = [0, 0], sizes = [8, 512], strides = [1, 1]} : vector<8x1024xf32> to vector<8x512xf32>
    %5 = vector.extract_strided_slice %0 {offsets = [0, 512], sizes = [8, 512], strides = [1, 1]} : vector<8x1024xf32> to vector<8x512xf32>
    %6 = tpu.concatenate %3, %4, %5 in 0 : vector<8x512xf32>, vector<8x512xf32>, vector<8x512xf32> -> vector<24x512xf32>
    %cst_3 = arith.constant dense<0.000000e+00> : vector<24x24xf32>
    %7 = tpu.matmul %6, %6, %cst_3 {dimension_numbers = #tpu.dot_dimension_numbers<[1], [1], [0], [0], [0, 0, 1, 0], [], []>} : vector<24x512xf32>, vector<24x512xf32>, vector<24x24xf32> -> vector<24x24xf32>
    %8 = tpu.iota {dimensions = array<i32: 0>} : vector<24x24xi32>
    %9 = tpu.iota {dimensions = array<i32: 1>} : vector<24x24xi32>
    %10 = arith.cmpi eq, %8, %9 : vector<24x24xi32>
    %cst_4 = arith.constant 0.000000e+00 : f32
    %11 = vector.broadcast %cst_4 : f32 to vector<24x24xf32>
    %12 = arith.select %10, %7, %11 : vector<24x24xi1>, vector<24x24xf32>
    %cst_5 = arith.constant dense<0.000000e+00> : vector<24xf32>
    %13 = vector.multi_reduction <add>, %12, %cst_5 [1] : vector<24x24xf32> to vector<24xf32>
    %14 = vector.shape_cast %13 : vector<24xf32> to vector<24x1xf32>
    %cst_6 = arith.constant dense<0.000000e+00> : vector<24xf32>
    %15 = vector.multi_reduction <add>, %12, %cst_6 [0] : vector<24x24xf32> to vector<24xf32>
    %16 = vector.shape_cast %15 : vector<24xf32> to vector<1x24xf32>
    %17 = vector.extract_strided_slice %7 {offsets = [0, 0], sizes = [8, 8], strides = [1, 1]} : vector<24x24xf32> to vector<8x8xf32>
    %18 = vector.extract_strided_slice %14 {offsets = [0, 0], sizes = [8, 1], strides = [1, 1]} : vector<24x1xf32> to vector<8x1xf32>
    %19 = vector.extract_strided_slice %16 {offsets = [0, 0], sizes = [1, 8], strides = [1, 1]} : vector<1x24xf32> to vector<1x8xf32>
    %20 = vector.broadcast %18 : vector<8x1xf32> to vector<8x8xf32>
    %21 = vector.broadcast %19 : vector<1x8xf32> to vector<8x8xf32>
    %22 = arith.addf %20, %21 : vector<8x8xf32>
    %cst_7 = arith.constant 2.000000e+00 : f32
    %23 = vector.broadcast %cst_7 : f32 to vector<8x8xf32>
    %24 = arith.mulf %23, %17 : vector<8x8xf32>
    %25 = arith.subf %22, %24 : vector<8x8xf32>
    %cst_8 = arith.constant 0.000000e+00 : f32
    %26 = vector.broadcast %cst_8 : f32 to vector<8x8xf32>
    %27 = arith.maximumf %25, %26 : vector<8x8xf32>
    %28 = math.sqrt %27 : vector<8x8xf32>
    %cst_9 = arith.constant dense<0xFF800000> : vector<8xf32>
    %29 = vector.multi_reduction <maximumf>, %28, %cst_9 [1] : vector<8x8xf32> to vector<8xf32>
    %30 = vector.shape_cast %29 : vector<8xf32> to vector<8x1xf32>
    %cst_10 = arith.constant dense<0xFF800000> : vector<1xf32>
    %31 = vector.multi_reduction <maximumf>, %30, %cst_10 [0] : vector<8x1xf32> to vector<1xf32>
    %32 = vector.shape_cast %31 : vector<1xf32> to vector<1x1xf32>
    %cst_11 = arith.constant 0.000000e+00 : f32
    %33 = vector.broadcast %cst_11 : f32 to vector<1x1xf32>
    %34 = arith.cmpf ogt, %32, %33 : vector<1x1xf32>
    %cst_12 = arith.constant 1.000000e-30 : f32
    %35 = vector.broadcast %cst_12 : f32 to vector<1x1xf32>
    %36 = arith.maximumf %32, %35 : vector<1x1xf32>
    %cst_13 = arith.constant 1.000000e+00 : f32
    %37 = vector.broadcast %cst_13 : f32 to vector<1x1xf32>
    %38 = arith.divf %37, %36 : vector<1x1xf32>
    %cst_14 = arith.constant 0.000000e+00 : f32
    %39 = vector.broadcast %cst_14 : f32 to vector<1x1xf32>
    %40 = arith.select %34, %38, %39 : vector<1x1xi1>, vector<1x1xf32>
    %41 = vector.broadcast %40 : vector<1x1xf32> to vector<8x8xf32>
    %42 = arith.mulf %28, %41 : vector<8x8xf32>
    %43 = vector.extract_strided_slice %7 {offsets = [8, 8], sizes = [8, 8], strides = [1, 1]} : vector<24x24xf32> to vector<8x8xf32>
    %44 = vector.extract_strided_slice %14 {offsets = [8, 0], sizes = [8, 1], strides = [1, 1]} : vector<24x1xf32> to vector<8x1xf32>
    %45 = vector.extract_strided_slice %16 {offsets = [0, 8], sizes = [1, 8], strides = [1, 1]} : vector<1x24xf32> to vector<1x8xf32>
    %46 = vector.broadcast %44 : vector<8x1xf32> to vector<8x8xf32>
    %47 = vector.broadcast %45 : vector<1x8xf32> to vector<8x8xf32>
    %48 = arith.addf %46, %47 : vector<8x8xf32>
    %cst_15 = arith.constant 2.000000e+00 : f32
    %49 = vector.broadcast %cst_15 : f32 to vector<8x8xf32>
    %50 = arith.mulf %49, %43 : vector<8x8xf32>
    %51 = arith.subf %48, %50 : vector<8x8xf32>
    %cst_16 = arith.constant 0.000000e+00 : f32
    %52 = vector.broadcast %cst_16 : f32 to vector<8x8xf32>
    %53 = arith.maximumf %51, %52 : vector<8x8xf32>
    %54 = math.sqrt %53 : vector<8x8xf32>
    %cst_17 = arith.constant dense<0xFF800000> : vector<8xf32>
    %55 = vector.multi_reduction <maximumf>, %54, %cst_17 [1] : vector<8x8xf32> to vector<8xf32>
    %56 = vector.shape_cast %55 : vector<8xf32> to vector<8x1xf32>
    %cst_18 = arith.constant dense<0xFF800000> : vector<1xf32>
    %57 = vector.multi_reduction <maximumf>, %56, %cst_18 [0] : vector<8x1xf32> to vector<1xf32>
    %58 = vector.shape_cast %57 : vector<1xf32> to vector<1x1xf32>
    %cst_19 = arith.constant 0.000000e+00 : f32
    %59 = vector.broadcast %cst_19 : f32 to vector<1x1xf32>
    %60 = arith.cmpf ogt, %58, %59 : vector<1x1xf32>
    %cst_20 = arith.constant 1.000000e-30 : f32
    %61 = vector.broadcast %cst_20 : f32 to vector<1x1xf32>
    %62 = arith.maximumf %58, %61 : vector<1x1xf32>
    %cst_21 = arith.constant 1.000000e+00 : f32
    %63 = vector.broadcast %cst_21 : f32 to vector<1x1xf32>
    %64 = arith.divf %63, %62 : vector<1x1xf32>
    %cst_22 = arith.constant 0.000000e+00 : f32
    %65 = vector.broadcast %cst_22 : f32 to vector<1x1xf32>
    %66 = arith.select %60, %64, %65 : vector<1x1xi1>, vector<1x1xf32>
    %67 = vector.broadcast %66 : vector<1x1xf32> to vector<8x8xf32>
    %68 = arith.mulf %54, %67 : vector<8x8xf32>
    %69 = vector.extract_strided_slice %7 {offsets = [16, 16], sizes = [8, 8], strides = [1, 1]} : vector<24x24xf32> to vector<8x8xf32>
    %70 = vector.extract_strided_slice %14 {offsets = [16, 0], sizes = [8, 1], strides = [1, 1]} : vector<24x1xf32> to vector<8x1xf32>
    %71 = vector.extract_strided_slice %16 {offsets = [0, 16], sizes = [1, 8], strides = [1, 1]} : vector<1x24xf32> to vector<1x8xf32>
    %72 = vector.broadcast %70 : vector<8x1xf32> to vector<8x8xf32>
    %73 = vector.broadcast %71 : vector<1x8xf32> to vector<8x8xf32>
    %74 = arith.addf %72, %73 : vector<8x8xf32>
    %cst_23 = arith.constant 2.000000e+00 : f32
    %75 = vector.broadcast %cst_23 : f32 to vector<8x8xf32>
    %76 = arith.mulf %75, %69 : vector<8x8xf32>
    %77 = arith.subf %74, %76 : vector<8x8xf32>
    %cst_24 = arith.constant 0.000000e+00 : f32
    %78 = vector.broadcast %cst_24 : f32 to vector<8x8xf32>
    %79 = arith.maximumf %77, %78 : vector<8x8xf32>
    %80 = math.sqrt %79 : vector<8x8xf32>
    %cst_25 = arith.constant dense<0xFF800000> : vector<8xf32>
    %81 = vector.multi_reduction <maximumf>, %80, %cst_25 [1] : vector<8x8xf32> to vector<8xf32>
    %82 = vector.shape_cast %81 : vector<8xf32> to vector<8x1xf32>
    %cst_26 = arith.constant dense<0xFF800000> : vector<1xf32>
    %83 = vector.multi_reduction <maximumf>, %82, %cst_26 [0] : vector<8x1xf32> to vector<1xf32>
    %84 = vector.shape_cast %83 : vector<1xf32> to vector<1x1xf32>
    %cst_27 = arith.constant 0.000000e+00 : f32
    %85 = vector.broadcast %cst_27 : f32 to vector<1x1xf32>
    %86 = arith.cmpf ogt, %84, %85 : vector<1x1xf32>
    %cst_28 = arith.constant 1.000000e-30 : f32
    %87 = vector.broadcast %cst_28 : f32 to vector<1x1xf32>
    %88 = arith.maximumf %84, %87 : vector<1x1xf32>
    %cst_29 = arith.constant 1.000000e+00 : f32
    %89 = vector.broadcast %cst_29 : f32 to vector<1x1xf32>
    %90 = arith.divf %89, %88 : vector<1x1xf32>
    %cst_30 = arith.constant 0.000000e+00 : f32
    %91 = vector.broadcast %cst_30 : f32 to vector<1x1xf32>
    %92 = arith.select %86, %90, %91 : vector<1x1xi1>, vector<1x1xf32>
    %93 = vector.broadcast %92 : vector<1x1xf32> to vector<8x8xf32>
    %94 = arith.mulf %80, %93 : vector<8x8xf32>
    %95 = vector.extract_strided_slice %68 {offsets = [0, 0], sizes = [1, 8], strides = [1, 1]} : vector<8x8xf32> to vector<1x8xf32>
    %96 = vector.extract_strided_slice %68 {offsets = [1, 0], sizes = [1, 8], strides = [1, 1]} : vector<8x8xf32> to vector<1x8xf32>
    %97 = vector.extract_strided_slice %68 {offsets = [2, 0], sizes = [1, 8], strides = [1, 1]} : vector<8x8xf32> to vector<1x8xf32>
    %98 = vector.extract_strided_slice %68 {offsets = [3, 0], sizes = [1, 8], strides = [1, 1]} : vector<8x8xf32> to vector<1x8xf32>
    %99 = vector.extract_strided_slice %68 {offsets = [4, 0], sizes = [1, 8], strides = [1, 1]} : vector<8x8xf32> to vector<1x8xf32>
    %100 = vector.extract_strided_slice %68 {offsets = [5, 0], sizes = [1, 8], strides = [1, 1]} : vector<8x8xf32> to vector<1x8xf32>
    %101 = vector.extract_strided_slice %68 {offsets = [6, 0], sizes = [1, 8], strides = [1, 1]} : vector<8x8xf32> to vector<1x8xf32>
    %102 = vector.extract_strided_slice %68 {offsets = [7, 0], sizes = [1, 8], strides = [1, 1]} : vector<8x8xf32> to vector<1x8xf32>
    %103 = tpu.concatenate %95, %96, %97, %98, %99, %100, %101, %102 in 1 : vector<1x8xf32>, vector<1x8xf32>, vector<1x8xf32>, vector<1x8xf32>, vector<1x8xf32>, vector<1x8xf32>, vector<1x8xf32>, vector<1x8xf32> -> vector<1x64xf32>
    %cst_31 = arith.constant 0.000000e+00 : f32
    %104 = vector.broadcast %cst_31 : f32 to vector<8x64xf32>
    %105 = vector.extract_strided_slice %68 {offsets = [0, 0], sizes = [8, 1], strides = [1, 1]} : vector<8x8xf32> to vector<8x1xf32>
    %106 = vector.broadcast %105 : vector<8x1xf32> to vector<8x64xf32>
    %107 = vector.broadcast %103 : vector<1x64xf32> to vector<8x64xf32>
    %108 = arith.cmpf ole, %106, %107 : vector<8x64xf32>
    %109 = arith.extui %108 : vector<8x64xi1> to vector<8x64xi32>
    %110 = arith.sitofp %109 : vector<8x64xi32> to vector<8x64xf32>
    %111 = arith.addf %104, %110 : vector<8x64xf32>
    %112 = vector.extract_strided_slice %68 {offsets = [0, 1], sizes = [8, 1], strides = [1, 1]} : vector<8x8xf32> to vector<8x1xf32>
    %113 = vector.broadcast %112 : vector<8x1xf32> to vector<8x64xf32>
    %114 = vector.broadcast %103 : vector<1x64xf32> to vector<8x64xf32>
    %115 = arith.cmpf ole, %113, %114 : vector<8x64xf32>
    %116 = arith.extui %115 : vector<8x64xi1> to vector<8x64xi32>
    %117 = arith.sitofp %116 : vector<8x64xi32> to vector<8x64xf32>
    %118 = arith.addf %111, %117 : vector<8x64xf32>
    %119 = vector.extract_strided_slice %68 {offsets = [0, 2], sizes = [8, 1], strides = [1, 1]} : vector<8x8xf32> to vector<8x1xf32>
    %120 = vector.broadcast %119 : vector<8x1xf32> to vector<8x64xf32>
    %121 = vector.broadcast %103 : vector<1x64xf32> to vector<8x64xf32>
    %122 = arith.cmpf ole, %120, %121 : vector<8x64xf32>
    %123 = arith.extui %122 : vector<8x64xi1> to vector<8x64xi32>
    %124 = arith.sitofp %123 : vector<8x64xi32> to vector<8x64xf32>
    %125 = arith.addf %118, %124 : vector<8x64xf32>
    %126 = vector.extract_strided_slice %68 {offsets = [0, 3], sizes = [8, 1], strides = [1, 1]} : vector<8x8xf32> to vector<8x1xf32>
    %127 = vector.broadcast %126 : vector<8x1xf32> to vector<8x64xf32>
    %128 = vector.broadcast %103 : vector<1x64xf32> to vector<8x64xf32>
    %129 = arith.cmpf ole, %127, %128 : vector<8x64xf32>
    %130 = arith.extui %129 : vector<8x64xi1> to vector<8x64xi32>
    %131 = arith.sitofp %130 : vector<8x64xi32> to vector<8x64xf32>
    %132 = arith.addf %125, %131 : vector<8x64xf32>
    %133 = vector.extract_strided_slice %68 {offsets = [0, 4], sizes = [8, 1], strides = [1, 1]} : vector<8x8xf32> to vector<8x1xf32>
    %134 = vector.broadcast %133 : vector<8x1xf32> to vector<8x64xf32>
    %135 = vector.broadcast %103 : vector<1x64xf32> to vector<8x64xf32>
    %136 = arith.cmpf ole, %134, %135 : vector<8x64xf32>
    %137 = arith.extui %136 : vector<8x64xi1> to vector<8x64xi32>
    %138 = arith.sitofp %137 : vector<8x64xi32> to vector<8x64xf32>
    %139 = arith.addf %132, %138 : vector<8x64xf32>
    %140 = vector.extract_strided_slice %68 {offsets = [0, 5], sizes = [8, 1], strides = [1, 1]} : vector<8x8xf32> to vector<8x1xf32>
    %141 = vector.broadcast %140 : vector<8x1xf32> to vector<8x64xf32>
    %142 = vector.broadcast %103 : vector<1x64xf32> to vector<8x64xf32>
    %143 = arith.cmpf ole, %141, %142 : vector<8x64xf32>
    %144 = arith.extui %143 : vector<8x64xi1> to vector<8x64xi32>
    %145 = arith.sitofp %144 : vector<8x64xi32> to vector<8x64xf32>
    %146 = arith.addf %139, %145 : vector<8x64xf32>
    %147 = vector.extract_strided_slice %68 {offsets = [0, 6], sizes = [8, 1], strides = [1, 1]} : vector<8x8xf32> to vector<8x1xf32>
    %148 = vector.broadcast %147 : vector<8x1xf32> to vector<8x64xf32>
    %149 = vector.broadcast %103 : vector<1x64xf32> to vector<8x64xf32>
    %150 = arith.cmpf ole, %148, %149 : vector<8x64xf32>
    %151 = arith.extui %150 : vector<8x64xi1> to vector<8x64xi32>
    %152 = arith.sitofp %151 : vector<8x64xi32> to vector<8x64xf32>
    %153 = arith.addf %146, %152 : vector<8x64xf32>
    %154 = vector.extract_strided_slice %68 {offsets = [0, 7], sizes = [8, 1], strides = [1, 1]} : vector<8x8xf32> to vector<8x1xf32>
    %155 = vector.broadcast %154 : vector<8x1xf32> to vector<8x64xf32>
    %156 = vector.broadcast %103 : vector<1x64xf32> to vector<8x64xf32>
    %157 = arith.cmpf ole, %155, %156 : vector<8x64xf32>
    %158 = arith.extui %157 : vector<8x64xi1> to vector<8x64xi32>
    %159 = arith.sitofp %158 : vector<8x64xi32> to vector<8x64xf32>
    %160 = arith.addf %153, %159 : vector<8x64xf32>
    %cst_32 = arith.constant 4.000000e+00 : f32
    %161 = vector.broadcast %cst_32 : f32 to vector<8x64xf32>
    %162 = arith.minimumf %160, %161 : vector<8x64xf32>
    %cst_33 = arith.constant dense<0.000000e+00> : vector<64xf32>
    %163 = vector.multi_reduction <add>, %162, %cst_33 [0] : vector<8x64xf32> to vector<64xf32>
    %164 = vector.shape_cast %163 : vector<64xf32> to vector<1x64xf32>
    %cst_34 = arith.constant 1.600000e+01 : f32
    %165 = vector.broadcast %cst_34 : f32 to vector<1x64xf32>
    %166 = arith.cmpf oge, %164, %165 : vector<1x64xf32>
    %cst_35 = arith.constant 0x7F800000 : f32
    %167 = vector.broadcast %cst_35 : f32 to vector<1x64xf32>
    %168 = arith.select %166, %103, %167 : vector<1x64xi1>, vector<1x64xf32>
    %cst_36 = arith.constant dense<0x7F800000> : vector<1xf32>
    %169 = vector.multi_reduction <minimumf>, %168, %cst_36 [1] : vector<1x64xf32> to vector<1xf32>
    %170 = vector.shape_cast %169 : vector<1xf32> to vector<1x1xf32>
    %171 = vector.broadcast %170 : vector<1x1xf32> to vector<8x8xf32>
    %172 = arith.cmpf olt, %68, %171 : vector<8x8xf32>
    %173 = vector.extract_strided_slice %94 {offsets = [0, 0], sizes = [1, 8], strides = [1, 1]} : vector<8x8xf32> to vector<1x8xf32>
    %174 = vector.extract_strided_slice %94 {offsets = [1, 0], sizes = [1, 8], strides = [1, 1]} : vector<8x8xf32> to vector<1x8xf32>
    %175 = vector.extract_strided_slice %94 {offsets = [2, 0], sizes = [1, 8], strides = [1, 1]} : vector<8x8xf32> to vector<1x8xf32>
    %176 = vector.extract_strided_slice %94 {offsets = [3, 0], sizes = [1, 8], strides = [1, 1]} : vector<8x8xf32> to vector<1x8xf32>
    %177 = vector.extract_strided_slice %94 {offsets = [4, 0], sizes = [1, 8], strides = [1, 1]} : vector<8x8xf32> to vector<1x8xf32>
    %178 = vector.extract_strided_slice %94 {offsets = [5, 0], sizes = [1, 8], strides = [1, 1]} : vector<8x8xf32> to vector<1x8xf32>
    %179 = vector.extract_strided_slice %94 {offsets = [6, 0], sizes = [1, 8], strides = [1, 1]} : vector<8x8xf32> to vector<1x8xf32>
    %180 = vector.extract_strided_slice %94 {offsets = [7, 0], sizes = [1, 8], strides = [1, 1]} : vector<8x8xf32> to vector<1x8xf32>
    %181 = tpu.concatenate %173, %174, %175, %176, %177, %178, %179, %180 in 1 : vector<1x8xf32>, vector<1x8xf32>, vector<1x8xf32>, vector<1x8xf32>, vector<1x8xf32>, vector<1x8xf32>, vector<1x8xf32>, vector<1x8xf32> -> vector<1x64xf32>
    %cst_37 = arith.constant 0.000000e+00 : f32
    %182 = vector.broadcast %cst_37 : f32 to vector<8x64xf32>
    %183 = vector.extract_strided_slice %94 {offsets = [0, 0], sizes = [8, 1], strides = [1, 1]} : vector<8x8xf32> to vector<8x1xf32>
    %184 = vector.broadcast %183 : vector<8x1xf32> to vector<8x64xf32>
    %185 = vector.broadcast %181 : vector<1x64xf32> to vector<8x64xf32>
    %186 = arith.cmpf ole, %184, %185 : vector<8x64xf32>
    %187 = arith.extui %186 : vector<8x64xi1> to vector<8x64xi32>
    %188 = arith.sitofp %187 : vector<8x64xi32> to vector<8x64xf32>
    %189 = arith.addf %182, %188 : vector<8x64xf32>
    %190 = vector.extract_strided_slice %94 {offsets = [0, 1], sizes = [8, 1], strides = [1, 1]} : vector<8x8xf32> to vector<8x1xf32>
    %191 = vector.broadcast %190 : vector<8x1xf32> to vector<8x64xf32>
    %192 = vector.broadcast %181 : vector<1x64xf32> to vector<8x64xf32>
    %193 = arith.cmpf ole, %191, %192 : vector<8x64xf32>
    %194 = arith.extui %193 : vector<8x64xi1> to vector<8x64xi32>
    %195 = arith.sitofp %194 : vector<8x64xi32> to vector<8x64xf32>
    %196 = arith.addf %189, %195 : vector<8x64xf32>
    %197 = vector.extract_strided_slice %94 {offsets = [0, 2], sizes = [8, 1], strides = [1, 1]} : vector<8x8xf32> to vector<8x1xf32>
    %198 = vector.broadcast %197 : vector<8x1xf32> to vector<8x64xf32>
    %199 = vector.broadcast %181 : vector<1x64xf32> to vector<8x64xf32>
    %200 = arith.cmpf ole, %198, %199 : vector<8x64xf32>
    %201 = arith.extui %200 : vector<8x64xi1> to vector<8x64xi32>
    %202 = arith.sitofp %201 : vector<8x64xi32> to vector<8x64xf32>
    %203 = arith.addf %196, %202 : vector<8x64xf32>
    %204 = vector.extract_strided_slice %94 {offsets = [0, 3], sizes = [8, 1], strides = [1, 1]} : vector<8x8xf32> to vector<8x1xf32>
    %205 = vector.broadcast %204 : vector<8x1xf32> to vector<8x64xf32>
    %206 = vector.broadcast %181 : vector<1x64xf32> to vector<8x64xf32>
    %207 = arith.cmpf ole, %205, %206 : vector<8x64xf32>
    %208 = arith.extui %207 : vector<8x64xi1> to vector<8x64xi32>
    %209 = arith.sitofp %208 : vector<8x64xi32> to vector<8x64xf32>
    %210 = arith.addf %203, %209 : vector<8x64xf32>
    %211 = vector.extract_strided_slice %94 {offsets = [0, 4], sizes = [8, 1], strides = [1, 1]} : vector<8x8xf32> to vector<8x1xf32>
    %212 = vector.broadcast %211 : vector<8x1xf32> to vector<8x64xf32>
    %213 = vector.broadcast %181 : vector<1x64xf32> to vector<8x64xf32>
    %214 = arith.cmpf ole, %212, %213 : vector<8x64xf32>
    %215 = arith.extui %214 : vector<8x64xi1> to vector<8x64xi32>
    %216 = arith.sitofp %215 : vector<8x64xi32> to vector<8x64xf32>
    %217 = arith.addf %210, %216 : vector<8x64xf32>
    %218 = vector.extract_strided_slice %94 {offsets = [0, 5], sizes = [8, 1], strides = [1, 1]} : vector<8x8xf32> to vector<8x1xf32>
    %219 = vector.broadcast %218 : vector<8x1xf32> to vector<8x64xf32>
    %220 = vector.broadcast %181 : vector<1x64xf32> to vector<8x64xf32>
    %221 = arith.cmpf ole, %219, %220 : vector<8x64xf32>
    %222 = arith.extui %221 : vector<8x64xi1> to vector<8x64xi32>
    %223 = arith.sitofp %222 : vector<8x64xi32> to vector<8x64xf32>
    %224 = arith.addf %217, %223 : vector<8x64xf32>
    %225 = vector.extract_strided_slice %94 {offsets = [0, 6], sizes = [8, 1], strides = [1, 1]} : vector<8x8xf32> to vector<8x1xf32>
    %226 = vector.broadcast %225 : vector<8x1xf32> to vector<8x64xf32>
    %227 = vector.broadcast %181 : vector<1x64xf32> to vector<8x64xf32>
    %228 = arith.cmpf ole, %226, %227 : vector<8x64xf32>
    %229 = arith.extui %228 : vector<8x64xi1> to vector<8x64xi32>
    %230 = arith.sitofp %229 : vector<8x64xi32> to vector<8x64xf32>
    %231 = arith.addf %224, %230 : vector<8x64xf32>
    %232 = vector.extract_strided_slice %94 {offsets = [0, 7], sizes = [8, 1], strides = [1, 1]} : vector<8x8xf32> to vector<8x1xf32>
    %233 = vector.broadcast %232 : vector<8x1xf32> to vector<8x64xf32>
    %234 = vector.broadcast %181 : vector<1x64xf32> to vector<8x64xf32>
    %235 = arith.cmpf ole, %233, %234 : vector<8x64xf32>
    %236 = arith.extui %235 : vector<8x64xi1> to vector<8x64xi32>
    %237 = arith.sitofp %236 : vector<8x64xi32> to vector<8x64xf32>
    %238 = arith.addf %231, %237 : vector<8x64xf32>
    %cst_38 = arith.constant 4.000000e+00 : f32
    %239 = vector.broadcast %cst_38 : f32 to vector<8x64xf32>
    %240 = arith.minimumf %238, %239 : vector<8x64xf32>
    %cst_39 = arith.constant dense<0.000000e+00> : vector<64xf32>
    %241 = vector.multi_reduction <add>, %240, %cst_39 [0] : vector<8x64xf32> to vector<64xf32>
    %242 = vector.shape_cast %241 : vector<64xf32> to vector<1x64xf32>
    %cst_40 = arith.constant 1.600000e+01 : f32
    %243 = vector.broadcast %cst_40 : f32 to vector<1x64xf32>
    %244 = arith.cmpf oge, %242, %243 : vector<1x64xf32>
    %cst_41 = arith.constant 0x7F800000 : f32
    %245 = vector.broadcast %cst_41 : f32 to vector<1x64xf32>
    %246 = arith.select %244, %181, %245 : vector<1x64xi1>, vector<1x64xf32>
    %cst_42 = arith.constant dense<0x7F800000> : vector<1xf32>
    %247 = vector.multi_reduction <minimumf>, %246, %cst_42 [1] : vector<1x64xf32> to vector<1xf32>
    %248 = vector.shape_cast %247 : vector<1xf32> to vector<1x1xf32>
    %249 = vector.broadcast %248 : vector<1x1xf32> to vector<8x8xf32>
    %250 = arith.cmpf olt, %94, %249 : vector<8x8xf32>
    %251 = arith.ori %172, %250 : vector<8x8xi1>
    %252 = vector.extract_strided_slice %42 {offsets = [0, 0], sizes = [1, 8], strides = [1, 1]} : vector<8x8xf32> to vector<1x8xf32>
    %253 = vector.extract_strided_slice %42 {offsets = [1, 0], sizes = [1, 8], strides = [1, 1]} : vector<8x8xf32> to vector<1x8xf32>
    %254 = vector.extract_strided_slice %42 {offsets = [2, 0], sizes = [1, 8], strides = [1, 1]} : vector<8x8xf32> to vector<1x8xf32>
    %255 = vector.extract_strided_slice %42 {offsets = [3, 0], sizes = [1, 8], strides = [1, 1]} : vector<8x8xf32> to vector<1x8xf32>
    %256 = vector.extract_strided_slice %42 {offsets = [4, 0], sizes = [1, 8], strides = [1, 1]} : vector<8x8xf32> to vector<1x8xf32>
    %257 = vector.extract_strided_slice %42 {offsets = [5, 0], sizes = [1, 8], strides = [1, 1]} : vector<8x8xf32> to vector<1x8xf32>
    %258 = vector.extract_strided_slice %42 {offsets = [6, 0], sizes = [1, 8], strides = [1, 1]} : vector<8x8xf32> to vector<1x8xf32>
    %259 = vector.extract_strided_slice %42 {offsets = [7, 0], sizes = [1, 8], strides = [1, 1]} : vector<8x8xf32> to vector<1x8xf32>
    %260 = tpu.concatenate %252, %253, %254, %255, %256, %257, %258, %259 in 1 : vector<1x8xf32>, vector<1x8xf32>, vector<1x8xf32>, vector<1x8xf32>, vector<1x8xf32>, vector<1x8xf32>, vector<1x8xf32>, vector<1x8xf32> -> vector<1x64xf32>
    %cst_43 = arith.constant 0.000000e+00 : f32
    %261 = vector.broadcast %cst_43 : f32 to vector<8x64xf32>
    %262 = vector.extract_strided_slice %42 {offsets = [0, 0], sizes = [8, 1], strides = [1, 1]} : vector<8x8xf32> to vector<8x1xf32>
    %263 = vector.broadcast %262 : vector<8x1xf32> to vector<8x64xf32>
    %264 = vector.broadcast %260 : vector<1x64xf32> to vector<8x64xf32>
    %265 = arith.cmpf ole, %263, %264 : vector<8x64xf32>
    %266 = arith.extui %265 : vector<8x64xi1> to vector<8x64xi32>
    %267 = arith.sitofp %266 : vector<8x64xi32> to vector<8x64xf32>
    %268 = arith.addf %261, %267 : vector<8x64xf32>
    %269 = vector.extract_strided_slice %42 {offsets = [0, 1], sizes = [8, 1], strides = [1, 1]} : vector<8x8xf32> to vector<8x1xf32>
    %270 = vector.broadcast %269 : vector<8x1xf32> to vector<8x64xf32>
    %271 = vector.broadcast %260 : vector<1x64xf32> to vector<8x64xf32>
    %272 = arith.cmpf ole, %270, %271 : vector<8x64xf32>
    %273 = arith.extui %272 : vector<8x64xi1> to vector<8x64xi32>
    %274 = arith.sitofp %273 : vector<8x64xi32> to vector<8x64xf32>
    %275 = arith.addf %268, %274 : vector<8x64xf32>
    %276 = vector.extract_strided_slice %42 {offsets = [0, 2], sizes = [8, 1], strides = [1, 1]} : vector<8x8xf32> to vector<8x1xf32>
    %277 = vector.broadcast %276 : vector<8x1xf32> to vector<8x64xf32>
    %278 = vector.broadcast %260 : vector<1x64xf32> to vector<8x64xf32>
    %279 = arith.cmpf ole, %277, %278 : vector<8x64xf32>
    %280 = arith.extui %279 : vector<8x64xi1> to vector<8x64xi32>
    %281 = arith.sitofp %280 : vector<8x64xi32> to vector<8x64xf32>
    %282 = arith.addf %275, %281 : vector<8x64xf32>
    %283 = vector.extract_strided_slice %42 {offsets = [0, 3], sizes = [8, 1], strides = [1, 1]} : vector<8x8xf32> to vector<8x1xf32>
    %284 = vector.broadcast %283 : vector<8x1xf32> to vector<8x64xf32>
    %285 = vector.broadcast %260 : vector<1x64xf32> to vector<8x64xf32>
    %286 = arith.cmpf ole, %284, %285 : vector<8x64xf32>
    %287 = arith.extui %286 : vector<8x64xi1> to vector<8x64xi32>
    %288 = arith.sitofp %287 : vector<8x64xi32> to vector<8x64xf32>
    %289 = arith.addf %282, %288 : vector<8x64xf32>
    %290 = vector.extract_strided_slice %42 {offsets = [0, 4], sizes = [8, 1], strides = [1, 1]} : vector<8x8xf32> to vector<8x1xf32>
    %291 = vector.broadcast %290 : vector<8x1xf32> to vector<8x64xf32>
    %292 = vector.broadcast %260 : vector<1x64xf32> to vector<8x64xf32>
    %293 = arith.cmpf ole, %291, %292 : vector<8x64xf32>
    %294 = arith.extui %293 : vector<8x64xi1> to vector<8x64xi32>
    %295 = arith.sitofp %294 : vector<8x64xi32> to vector<8x64xf32>
    %296 = arith.addf %289, %295 : vector<8x64xf32>
    %297 = vector.extract_strided_slice %42 {offsets = [0, 5], sizes = [8, 1], strides = [1, 1]} : vector<8x8xf32> to vector<8x1xf32>
    %298 = vector.broadcast %297 : vector<8x1xf32> to vector<8x64xf32>
    %299 = vector.broadcast %260 : vector<1x64xf32> to vector<8x64xf32>
    %300 = arith.cmpf ole, %298, %299 : vector<8x64xf32>
    %301 = arith.extui %300 : vector<8x64xi1> to vector<8x64xi32>
    %302 = arith.sitofp %301 : vector<8x64xi32> to vector<8x64xf32>
    %303 = arith.addf %296, %302 : vector<8x64xf32>
    %304 = vector.extract_strided_slice %42 {offsets = [0, 6], sizes = [8, 1], strides = [1, 1]} : vector<8x8xf32> to vector<8x1xf32>
    %305 = vector.broadcast %304 : vector<8x1xf32> to vector<8x64xf32>
    %306 = vector.broadcast %260 : vector<1x64xf32> to vector<8x64xf32>
    %307 = arith.cmpf ole, %305, %306 : vector<8x64xf32>
    %308 = arith.extui %307 : vector<8x64xi1> to vector<8x64xi32>
    %309 = arith.sitofp %308 : vector<8x64xi32> to vector<8x64xf32>
    %310 = arith.addf %303, %309 : vector<8x64xf32>
    %311 = vector.extract_strided_slice %42 {offsets = [0, 7], sizes = [8, 1], strides = [1, 1]} : vector<8x8xf32> to vector<8x1xf32>
    %312 = vector.broadcast %311 : vector<8x1xf32> to vector<8x64xf32>
    %313 = vector.broadcast %260 : vector<1x64xf32> to vector<8x64xf32>
    %314 = arith.cmpf ole, %312, %313 : vector<8x64xf32>
    %315 = arith.extui %314 : vector<8x64xi1> to vector<8x64xi32>
    %316 = arith.sitofp %315 : vector<8x64xi32> to vector<8x64xf32>
    %317 = arith.addf %310, %316 : vector<8x64xf32>
    %cst_44 = arith.constant 4.000000e+00 : f32
    %318 = vector.broadcast %cst_44 : f32 to vector<8x64xf32>
    %319 = arith.minimumf %317, %318 : vector<8x64xf32>
    %cst_45 = arith.constant dense<0.000000e+00> : vector<64xf32>
    %320 = vector.multi_reduction <add>, %319, %cst_45 [0] : vector<8x64xf32> to vector<64xf32>
    %321 = vector.shape_cast %320 : vector<64xf32> to vector<1x64xf32>
    %cst_46 = arith.constant 1.600000e+01 : f32
    %322 = vector.broadcast %cst_46 : f32 to vector<1x64xf32>
    %323 = arith.cmpf oge, %321, %322 : vector<1x64xf32>
    %cst_47 = arith.constant 0x7F800000 : f32
    %324 = vector.broadcast %cst_47 : f32 to vector<1x64xf32>
    %325 = arith.select %323, %260, %324 : vector<1x64xi1>, vector<1x64xf32>
    %cst_48 = arith.constant dense<0x7F800000> : vector<1xf32>
    %326 = vector.multi_reduction <minimumf>, %325, %cst_48 [1] : vector<1x64xf32> to vector<1xf32>
    %327 = vector.shape_cast %326 : vector<1xf32> to vector<1x1xf32>
    %328 = vector.broadcast %327 : vector<1x1xf32> to vector<8x8xf32>
    %329 = arith.cmpf olt, %42, %328 : vector<8x8xf32>
    %330 = arith.ori %251, %329 : vector<8x8xi1>
    %331 = arith.extui %330 : vector<8x8xi1> to vector<8x8xi32>
    %332 = arith.sitofp %331 : vector<8x8xi32> to vector<8x8xf32>
    %cst_49 = arith.constant dense<0.000000e+00> : vector<8xf32>
    %333 = vector.multi_reduction <add>, %332, %cst_49 [1] : vector<8x8xf32> to vector<8xf32>
    %334 = vector.shape_cast %333 : vector<8xf32> to vector<8x1xf32>
    %cst_50 = arith.constant dense<0.000000e+00> : vector<8xf32>
    %335 = vector.multi_reduction <add>, %332, %cst_50 [0] : vector<8x8xf32> to vector<8xf32>
    %336 = vector.shape_cast %335 : vector<8xf32> to vector<1x8xf32>
    %cst_51 = arith.constant 0.000000e+00 : f32
    %337 = vector.broadcast %cst_51 : f32 to vector<8x1xf32>
    %338 = arith.cmpf ogt, %334, %337 : vector<8x1xf32>
    %cst_52 = arith.constant 1.000000e+00 : f32
    %339 = vector.broadcast %cst_52 : f32 to vector<8x1xf32>
    %340 = arith.maximumf %334, %339 : vector<8x1xf32>
    %cst_53 = arith.constant 1.000000e+00 : f32
    %341 = vector.broadcast %cst_53 : f32 to vector<8x1xf32>
    %342 = arith.divf %341, %340 : vector<8x1xf32>
    %cst_54 = arith.constant 0.000000e+00 : f32
    %343 = vector.broadcast %cst_54 : f32 to vector<8x1xf32>
    %344 = arith.select %338, %342, %343 : vector<8x1xi1>, vector<8x1xf32>
    %cst_55 = arith.constant 0.000000e+00 : f32
    %345 = vector.broadcast %cst_55 : f32 to vector<1x8xf32>
    %346 = arith.cmpf ogt, %336, %345 : vector<1x8xf32>
    %cst_56 = arith.constant 1.000000e+00 : f32
    %347 = vector.broadcast %cst_56 : f32 to vector<1x8xf32>
    %348 = arith.maximumf %336, %347 : vector<1x8xf32>
    %cst_57 = arith.constant 1.000000e+00 : f32
    %349 = vector.broadcast %cst_57 : f32 to vector<1x8xf32>
    %350 = arith.divf %349, %348 : vector<1x8xf32>
    %cst_58 = arith.constant 0.000000e+00 : f32
    %351 = vector.broadcast %cst_58 : f32 to vector<1x8xf32>
    %352 = arith.select %346, %350, %351 : vector<1x8xi1>, vector<1x8xf32>
    %353 = vector.broadcast %344 : vector<8x1xf32> to vector<8x8xf32>
    %354 = arith.mulf %353, %332 : vector<8x8xf32>
    %355 = vector.broadcast %352 : vector<1x8xf32> to vector<8x8xf32>
    %356 = arith.mulf %332, %355 : vector<8x8xf32>
    %cst_59 = arith.constant dense<0.000000e+00> : vector<8x8xf32>
    %357 = tpu.matmul %354, %356, %cst_59 {dimension_numbers = #tpu.dot_dimension_numbers<[1], [1], [0], [0], [0, 0, 1, 0], [], []>} : vector<8x8xf32>, vector<8x8xf32>, vector<8x8xf32> -> vector<8x8xf32>
    %358 = arith.truncf %0 : vector<8x1024xf32> to vector<8x1024xbf16>
    %c0_60 = arith.constant 0 : index
    %c0_61 = arith.constant 0 : index
    %359 = vector.load %arg3[%c0_60, %c0_61] : memref<1024x65xbf16, #tpu.memory_space<vmem>>, vector<1024x65xbf16>
    %cst_62 = arith.constant dense<0.000000e+00> : vector<8x65xf32>
    %360 = tpu.matmul %358, %359, %cst_62 {dimension_numbers = #tpu.dot_dimension_numbers<[1], [0], [0], [1], [0, 0, 1, 1], [], []>} : vector<8x1024xbf16>, vector<1024x65xbf16>, vector<8x65xf32> -> vector<8x65xf32>
    %361 = vector.extract_strided_slice %360 {offsets = [0, 64], sizes = [8, 1], strides = [1, 1]} : vector<8x65xf32> to vector<8x1xf32>
    %362 = vector.extract_strided_slice %360 {offsets = [0, 0], sizes = [8, 64], strides = [1, 1]} : vector<8x65xf32> to vector<8x64xf32>
    %c0_63 = arith.constant 0 : index
    %c0_64 = arith.constant 0 : index
    %363 = vector.load %arg4[%c0_63, %c0_64] : memref<1x64xf32, #tpu.memory_space<vmem>>, vector<1x64xf32>
    %364 = vector.broadcast %363 : vector<1x64xf32> to vector<8x64xf32>
    %365 = arith.addf %362, %364 : vector<8x64xf32>
    %cst_65 = arith.constant dense<0.000000e+00> : vector<8x64xf32>
    %366 = tpu.matmul %357, %365, %cst_65 {dimension_numbers = #tpu.dot_dimension_numbers<[1], [0], [0], [1], [0, 0, 1, 1], [], []>} : vector<8x8xf32>, vector<8x64xf32>, vector<8x64xf32> -> vector<8x64xf32>
    %c0_66 = arith.constant 0 : index
    %c0_67 = arith.constant 0 : index
    %367 = vector.load %arg5[%c0_66, %c0_67] : memref<64x32xf32, #tpu.memory_space<vmem>>, vector<64x32xf32>
    %cst_68 = arith.constant dense<0.000000e+00> : vector<8x32xf32>
    %368 = tpu.matmul %366, %367, %cst_68 {dimension_numbers = #tpu.dot_dimension_numbers<[1], [0], [0], [1], [0, 0, 1, 1], [], []>} : vector<8x64xf32>, vector<64x32xf32>, vector<8x32xf32> -> vector<8x32xf32>
    %c0_69 = arith.constant 0 : index
    %c0_70 = arith.constant 0 : index
    %369 = vector.load %arg6[%c0_69, %c0_70] : memref<1x32xf32, #tpu.memory_space<vmem>>, vector<1x32xf32>
    %370 = vector.broadcast %369 : vector<1x32xf32> to vector<8x32xf32>
    %371 = arith.addf %368, %370 : vector<8x32xf32>
    %cst_71 = arith.constant dense<0.000000e+00> : vector<8x32xf32>
    %372 = tpu.matmul %357, %371, %cst_71 {dimension_numbers = #tpu.dot_dimension_numbers<[1], [0], [0], [1], [0, 0, 1, 1], [], []>} : vector<8x8xf32>, vector<8x32xf32>, vector<8x32xf32> -> vector<8x32xf32>
    %c0_72 = arith.constant 0 : index
    %c0_73 = arith.constant 0 : index
    %373 = vector.load %arg2[%c0_72, %c0_73] : memref<8x2xf32, #tpu.memory_space<vmem>>, vector<8x2xf32>
    %cst_74 = arith.constant 1.000000e+00 : f32
    %374 = vector.broadcast %cst_74 : f32 to vector<8x1xf32>
    %375 = tpu.concatenate %373, %374 in 1 : vector<8x2xf32>, vector<8x1xf32> -> vector<8x3xf32>
    %c0_75 = arith.constant 0 : index
    %c0_76 = arith.constant 0 : index
    %376 = vector.load %arg7[%c0_75, %c0_76] : memref<32x128xf32, #tpu.memory_space<vmem>>, vector<32x128xf32>
    %cst_77 = arith.constant dense<0.000000e+00> : vector<8x128xf32>
    %377 = tpu.matmul %372, %376, %cst_77 {dimension_numbers = #tpu.dot_dimension_numbers<[1], [0], [0], [1], [0, 0, 1, 1], [], []>} : vector<8x32xf32>, vector<32x128xf32>, vector<8x128xf32> -> vector<8x128xf32>
    %c0_78 = arith.constant 0 : index
    %c0_79 = arith.constant 0 : index
    %378 = vector.load %arg8[%c0_78, %c0_79] : memref<3x128xf32, #tpu.memory_space<vmem>>, vector<3x128xf32>
    %cst_80 = arith.constant dense<0.000000e+00> : vector<8x128xf32>
    %379 = tpu.matmul %375, %378, %cst_80 {dimension_numbers = #tpu.dot_dimension_numbers<[1], [0], [0], [1], [0, 0, 1, 1], [], []>} : vector<8x3xf32>, vector<3x128xf32>, vector<8x128xf32> -> vector<8x128xf32>
    %380 = arith.addf %377, %379 : vector<8x128xf32>
    %cst_81 = arith.constant 0.000000e+00 : f32
    %381 = vector.broadcast %cst_81 : f32 to vector<8x127xf32>
    %382 = tpu.concatenate %361, %381 in 1 : vector<8x1xf32>, vector<8x127xf32> -> vector<8x128xf32>
    %383 = arith.addf %380, %382 : vector<8x128xf32>
    %c0_82 = arith.constant 0 : index
    %c0_83 = arith.constant 0 : index
    %384 = vector.load %arg9[%c0_82, %c0_83] : memref<8x128xf32, #tpu.memory_space<vmem>>, vector<8x128xf32>
    tpu.vector_store %arg9[%c0_82, %c0_83], %383 {strides = array<i32>} : memref<8x128xf32, #tpu.memory_space<vmem>>, vector<8x128xf32>,
    return
  }
}

</mosaic_0001>

<bundles_post_ra>
// kernel: model_forward.1
= control target key start
LH: loop header
LB: loop body
LE: loop exit
PB: predicated region body
PF: predicated region fallthrough
CT: control target
= control target key end

     0   :  { %v2338_v3 = vmov 0.0   ;;  %v203_v15 = vlaneseq  ;;  %vm215_vm2 = vcmask 195584   ;;  %vm298_vm5 = vcmask 195712   ;;  %s2344_s28 = smov 40   ;;  %s2346_s29 = smov 48   ;;  %s2938_s0 = inlined_call_operand.vmem [shape: f32[8,1024], index: 0, kind: input, shape index: {}]   ;;  %s2939_s1 = inlined_call_operand.vmem [shape: f32[8,256], index: 1, kind: input, shape index: {}]   ;;  %s2940_s3 = inlined_call_operand.vmem [shape: bf16[1024,65], index: 3, kind: input, shape index: {}]   ;;  %s2941_s4 = inlined_call_operand.vmem [shape: f32[1,64], index: 4, kind: input, shape index: {}]   ;;  %s2942_s5 = inlined_call_operand.vmem [shape: f32[64,32], index: 5, kind: input, shape index: {}]   ;;  %s2943_s7 = inlined_call_operand.vmem [shape: f32[32,128], index: 7, kind: input, shape index: {}]   ;;  %s2944_s6 = inlined_call_operand.vmem [shape: f32[1,32], index: 6, kind: input, shape index: {}]   ;;  %s2945_s8 = inlined_call_operand.vmem [shape: f32[3,128], index: 8, kind: input, shape index: {}]   ;;  %s2946_s2 = inlined_call_operand.vmem [shape: f32[8,2], index: 2, kind: input, shape index: {}]   ;;  %s2947_s9 = inlined_call_operand.vmem [shape: f32[8,128], index: 9, kind: output, shape index: {}]  }
   0x1   :  { %v34_v0 = vld [vmem:[%s2938_s0 + $0x8] sm:$0xff]  ;;  %v33_v2 = vld [vmem:[%s2938_s0] sm:$0xff]  ;;  %2106 = vmatprep.subr.mxu1 %v2338_v3  ;;  %v36_v8 = vld [vmem:[%s2938_s0 + $0x18] sm:$0xff]  ;;  %vm271_vm9 = vcmask 130112   ;;  %vm244_vm11 = vcmask 64512   ;;  %s2347_s30 = smov 8  }
   0x2   :  { %v42_v1 = vld [vmem:[%s2939_s1 + $0x8] sm:$0xff]  ;;  %v41_v5 = vld [vmem:[%s2939_s1] sm:$0xff]  ;;  %v2160_v10 = vpack.c.bf16 %v36_v8, %v2338_v3  ;;  %v35_v11 = vld [vmem:[%s2938_s0 + $0x10] sm:$0xff]  ;;  %v2460_v16 = vshrl.u32 %v203_v15, 7  ;;  %v208_v17 = vand.u32 127, %v203_v15  ;;  %s2349_s10 = smov 112  }
   0x3   :  { %v2156_v4 = vpack.c.bf16 %v34_v0, %v42_v1  ;;  %107 = vmatprep.mubr.f32.mxu0 %v42_v1  ;;  %v2158_v6 = vpack.c.bf16 %v33_v2, %v41_v5  ;;  %v38_v7 = vld [vmem:[%s2938_s0 + $0x28] sm:$0xff]  ;;  %v37_v9 = vld [vmem:[%s2938_s0 + $0x20] sm:$0xff]  ;;  %v2162_v12 = vpack.c.bf16 %v35_v11, %v2338_v3  ;;  %v40_v13 = vld [vmem:[%s2938_s0 + $0x38] sm:$0xff]  ;;  %s2350_s11 = smov 16   ;;  %s2351_s12 = smov 24  }
   0x4   :  { %v39_v14 = vld [vmem:[%s2938_s0 + $0x30] sm:$0xff]  ;;  %v205_v18 = vadd.s32 8, %v2460_v16  ;;  %vm209_vm0 = vcmp.eq.s32.totalorder %v2460_v16, %v208_v17  ;;  %v206_v21 = vadd.s32 16, %v2460_v16  ;;  %s2353_s13 = smov 32   ;;  %s2354_s14 = smov 56  }
   0x5   :  { %2157 = vmatprep.subr.bf16.mxu0 %v2156_v4  ;;  %s2359_s15 = smov 120  }
   0x6   :  { %2159 = vmatpush1.bf16.xpose.msra.mxu0 %v2158_v6  ;;  %vm210_vm1 = vcmp.eq.s32.totalorder %v205_v18, %v208_v17  ;;  %vm211_vm3 = vcmp.eq.s32.totalorder %v206_v21, %v208_v17 }
   0x7   :  { %47 = vmatprep.subr.mxu0 %v38_v7 }
   0xe   :  { %48 = vmatpush1.xpose.msra.mxu0 %v37_v9 }
   0xf   :  { %2161 = vmatprep.subr.bf16.mxu0 %v2160_v10  ;;  %v2339_v10 = vmov 1  }
  0x10   :  { %2226 = vset.pattern.permute.xlu1 %v2339_v10  ;;  %v2363_v10 = vmov 11  }
  0x11   :  { %108 = vmatmul.mubr.f32.vlgmr.msra.gmra.mrb[0].mxu0 %v41_v5 }
  0x12   :  { %2163 = vmatpush1.bf16.xpose.msra.mxu0 %v2162_v12  ;;  %112 = vmatprep.mubr.f32.mxu0 %v34_v0 }
  0x13   :  { %127 = vmatprep.subr.mxu0 %v40_v13 }
  0x15   :  { %113 = vmatmul.mubr.f32.gmra.mrb[2].mxu0 %v33_v2 }
  0x16   :  { %117 = vmatprep.mubr.f32.mxu0 %v38_v7 }
  0x19   :  { %118 = vmatmul.mubr.f32.gmra.mrb[4].mxu0 %v37_v9 }
  0x1a   :  { %128 = vmatpush1.xpose.msra.mxu0 %v39_v14  ;;  %187 = vmatprep.mubr.f32.mxu0 %v2338_v3 }
  0x1d   :  { %188 = vmatmul.mubr.f32.vlgmr.msra.gmra.mrb[0].mxu0 %v2338_v3 }
  0x1e   :  { %192 = vmatprep.mubr.f32.mxu0 %v36_v8 }
  0x21   :  { %193 = vmatmul.mubr.f32.gmra.mrb[2].mxu0 %v35_v11  ;;  %v2340_v11 = vmov 0  }
  0x22   :  { %197 = vmatprep.mubr.f32.mxu0 %v40_v13  ;;  %2225 = vset.pattern.permute.xlu0 %v2340_v11 }
  0x25   :  { %198 = vmatmul.mubr.f32.gmra.mrb[4].mxu0 %v39_v14 }
  0xf0   :  { %v189_v19 = vpop.f32.mrb[0].mxu0 }
  0xf1   :  { %v191_v20 = vpop.f32.mrb[1].mxu0  ;;  %v212_v22 = vsel %vm209_vm0, %v189_v19, 0.0  ;;  %v234_v50 = vmul.f32 2.0, %v189_v19  ;;  %vm345_vm0 = vcmask 130048  }
  0xf2   :  { %v216_v27 = vsel %vm215_vm2, %v212_v22, 0.0 }
  0xf4   :  { %v194_v23 = vpop.f32.mrb[2].mxu0 }
  0xf5   :  { %v196_v24 = vpop.f32.mrb[3].mxu0  ;;  %v213_v25 = vsel %vm210_vm1, %v194_v23, 0.0  ;;  %v261_v41 = vmul.f32 2.0, %v194_v23  ;;  %vm348_vm1 = vcmask 261120  }
  0xf6   :  { %v219_v26 = vsel %vm215_vm2, %v213_v25, 0.0 }
  0xf7   :  { %220 = vadd.xlane.f32.xlu1 %v219_v26  ;;  %v225_v28 = vadd.f32 %v219_v26, %v216_v27 }
  0xf8   :  { %v199_v29 = vpop.f32.mrb[4].mxu0 }
  0xf9   :  { %v201_v30 = vpop.f32.mrb[5].mxu0  ;;  %v214_v31 = vsel %vm211_vm3, %v199_v29, 0.0  ;;  %v288_v45 = vmul.f32 2.0, %v199_v29  ;;  %vm350_vm3 = vcmask 326656  }
  0xfa   :  { %v222_v32 = vsel %vm215_vm2, %v214_v31, 0.0 }
  0xfb   :  { %223 = vadd.xlane.f32.xlu0 %v222_v32  ;;  %v226_v33 = vadd.f32 %v225_v28, %v222_v32 }
  0xfd   :  { %v227_v34 = vrot.slane %v226_v33, 4 }
  0xff   :  { %217 = vadd.xlane.f32.xlu0 %v216_v27  ;;  %v228_v35 = vadd.f32 %v227_v34, %v226_v33  ;;  %v2341_v34 = vmov 2  }
 0x101   :  { %v229_v36 = vrot.slane %v228_v35, 2 }
 0x103   :  { %v230_v37 = vadd.f32 %v229_v36, %v228_v35  ;;  %v2342_v35 = vmov 3  }
 0x105   :  { %v231_v38 = vrot.slane %v230_v37, 1 }
 0x107   :  { %v232_v39 = vadd.f32 %v231_v38, %v230_v37 }
 0x184   :  { %v221_v40 = vpop.xlane.xlu1 %220 }
 0x185   :  { %v260_v42 = vadd.f32 %v232_v39, %v221_v40  ;;  %v2343_v40 = vmov 4  }
 0x187   :  { %v262_v43 = vsub.f32 %v260_v42, %v261_v41  ;;  %v2345_v41 = vmov 16  }
 0x188   :  { %v224_v44 = vpop.xlane.xlu0 %223 }
 0x189   :  { %v263_v46 = vmax.f32 %v262_v43, 0.0  ;;  %v287_v47 = vadd.f32 %v232_v39, %v224_v44 }
 0x18b   :  { %v289_v48 = vsub.f32 %v287_v47, %v288_v45  ;;  %2314 = vrsqrt.f32 %v263_v46  ;;  %vm266_vm6 = vcmp.eq.f32.partialorder %v263_v46, inf  ;;  %v269_v0 = vand.u32 2147483648, %v263_v46 }
 0x18c   :  { %v218_v49 = vpop.xlane.xlu0 %217  ;;  %vm268_vm8 = vcmp.eq.f32.partialorder %v263_v46, 0.0  ;;  %v2348_v47 = vmov 17  }
 0x18d   :  { %v290_v51 = vmax.f32 %v289_v48, 0.0  ;;  %v233_v52 = vadd.f32 %v232_v39, %v218_v49 }
 0x18f   :  { %v235_v53 = vsub.f32 %v233_v52, %v234_v50  ;;  %2316 = vrsqrt.f32 %v290_v51  ;;  %vm293_vm4 = vcmp.eq.f32.partialorder %v290_v51, inf  ;;  %v296_v59 = vand.u32 2147483648, %v290_v51 }
 0x190   :  { %vm295_vm7 = vcmp.eq.f32.partialorder %v290_v51, 0.0 }
 0x191   :  { %v236_v54 = vmax.f32 %v235_v53, 0.0 }
 0x193   :  { %2318 = vrsqrt.f32 %v236_v54  ;;  %vm239_vm10 = vcmp.eq.f32.partialorder %v236_v54, inf  ;;  %v242_v5 = vand.u32 2147483648, %v236_v54  ;;  %vm241_vm12 = vcmp.eq.f32.partialorder %v236_v54, 0.0 }
 0x195   :  { %v2315_v55 = vpop.eup %2314 }
 0x196   :  { %v265_v56 = vmul.f32 %v2315_v55, %v263_v46 }
 0x198   :  { %v267_v61 = vsel %vm266_vm6, %v263_v46, %v265_v56 }
 0x199   :  { %v2317_v57 = vpop.eup %2316  ;;  %v2471_v4 = vsel %vm268_vm8, %v269_v0, %v267_v61 }
 0x19a   :  { %v292_v58 = vmul.f32 %v2317_v57, %v290_v51  ;;  %v272_v8 = vsel %vm271_vm9, %v2471_v4, -inf  ;;  %v2355_v57 = vmov 21  }
 0x19c   :  { %v294_v60 = vsel %vm293_vm4, %v290_v51, %v292_v58  ;;  %vm352_vm4 = vcmask 392192  }
 0x19d   :  { %v2319_v62 = vpop.eup %2318  ;;  %v2468_v63 = vsel %vm295_vm7, %v296_v59, %v294_v60  ;;  %v2356_v59 = vmov 19  }
 0x19e   :  { %v299_v1 = vsel %vm298_vm5, %v2468_v63, -inf  ;;  %v238_v2 = vmul.f32 %v2319_v62, %v236_v54  ;;  %v2357_v62 = vmov 6   ;;  %vm354_vm5 = vcmask 457728  }
 0x19f   :  { %300 = vmax.xlane.f32.xlu1 %v299_v1 }
 0x1a0   :  { %v240_v6 = vsel %vm239_vm10, %v236_v54, %v238_v2  ;;  %v2352_v54 = vmov 18   ;;  %v2360_v2 = vmov 9  }
 0x1a1   :  { %v243_v7 = vsel %vm241_vm12, %v242_v5, %v240_v6  ;;  %v2361_v6 = vmov 5  }
 0x1a2   :  { %v245_v9 = vsel %vm244_vm11, %v243_v7, -inf }
 0x1a3   :  { %273 = vmax.xlane.f32.xlu1 %v272_v8  ;;  %246 = vmax.xlane.f32.xlu0 %v245_v9  ;;  %v2362_v9 = vmov 10  }
 0x22c   :  { %v301_v12 = vpop.xlane.xlu1 %300 }
 0x22d   :  { %v302_v14 = vrot.slane %v301_v12, 4 }
 0x22f   :  { %v303_v18 = vmax.f32 %v301_v12, %v302_v14  ;;  %v2364_v12 = vmov 22   ;;  %v2366_v14 = vmov 23  }
 0x230   :  { %v247_v13 = vpop.xlane.xlu0 %246  ;;  %v274_v31 = vpop.xlane.xlu1 %273 }
 0x231   :  { %v248_v15 = vrot.slane %v247_v13, 4  ;;  %v304_v21 = vrot.slane %v303_v18, 2  ;;  %v275_v33 = vrot.slane %v274_v31, 4 }
 0x233   :  { %v249_v17 = vmax.f32 %v247_v13, %v248_v15  ;;  %v305_v24 = vmax.f32 %v303_v18, %v304_v21  ;;  %v276_v36 = vmax.f32 %v274_v31, %v275_v33  ;;  %v2365_v13 = vmov 14  }
 0x234   :  { %v2367_v15 = vmov 7   ;;  %v2368_v18 = vmov 8  }
 0x235   :  { %v250_v19 = vrot.slane %v249_v17, 2  ;;  %v306_v26 = vrot.slane %v305_v24, 1  ;;  %v277_v39 = vrot.slane %v276_v36, 2 }
 0x237   :  { %v251_v20 = vmax.f32 %v249_v17, %v250_v19  ;;  %v307_v27 = vmax.f32 %v305_v24, %v306_v26  ;;  %v278_v45 = vmax.f32 %v276_v36, %v277_v39  ;;  %v2370_v24 = vmov 13  }
 0x239   :  { %v252_v22 = vrot.slane %v251_v20, 1  ;;  %v309_v28 = vmax.f32 %v307_v27, 1e-30  ;;  %vm308_vm14 = vcmp.gt.f32.partialorder %v307_v27, 0.0  ;;  %v279_v49 = vrot.slane %v278_v45, 1 }
 0x23b   :  { %v253_v23 = vmax.f32 %v251_v20, %v252_v22  ;;  %v280_v51 = vmax.f32 %v278_v45, %v279_v49  ;;  %v2369_v20 = vmov 12  }
 0x23d   :  { %v255_v25 = vmax.f32 %v253_v23, 1e-30  ;;  %vm254_vm13 = vcmp.gt.f32.partialorder %v253_v23, 0.0  ;;  %v282_v53 = vmax.f32 %v280_v51, 1e-30  ;;  %vm281_vm15 = vcmp.gt.f32.partialorder %v280_v51, 0.0 }
 0x23e   :  { %v2559_v51 = vsub.s32 0, %v2460_v16 }
 0x23f   :  { %2320 = vrcp.f32 %v255_v25  ;;  %v2371_v25 = vmov 15  }
 0x240   :  { %2322 = vrcp.f32 %v309_v28 }
 0x241   :  { %2324 = vrcp.f32 %v282_v53 }
 0x249   :  { %v2321_v29 = vpop.eup %2320 }
 0x24a   :  { %v258_v30 = vsel %vm254_vm13, %v2321_v29, 0.0  ;;  %v2323_v38 = vpop.eup %2322 }
 0x24b   :  { %v2477_v32 = vmul.f32 %v258_v30, %v243_v7  ;;  %v312_v43 = vsel %vm308_vm14, %v2323_v38, 0.0  ;;  %v2325_v60 = vpop.eup %2324 }
 0x24c   :  { %v2491_v46 = vmul.f32 %v312_v43, %v2468_v63  ;;  %v285_v61 = vsel %vm281_vm15, %v2325_v60, 0.0  ;;  %v2358_v63 = vmov 20  }
 0x24d   :  { %621 = vperm.xlu1 %2226, %v2477_v32   ;;  %609 = vperm.xlu0 %2225, %v2477_v32   ;;  %v589_v37 = vrot.slane %v2477_v32, 5  ;;  %v593_v42 = vrot.slane %v2477_v32, 6  ;;  %v573_v44 = vrot.slane %v2477_v32, 1  ;;  %v577_v48 = vrot.slane %v2477_v32, 2 }
 0x24e   :  { %v581_v50 = vrot.slane %v2477_v32, 3  ;;  %v585_v52 = vrot.slane %v2477_v32, 4  ;;  %v458_v55 = vrot.slane %v2491_v46, 4  ;;  %v597_v56 = vrot.slane %v2477_v32, 7 }
 0x24f   :  { %v470_v58 = vrot.slane %v2491_v46, 7  ;;  %v2513_v0 = vmul.f32 %v285_v61, %v2471_v4  ;;  %v448_v1 = vrot.slane %v2491_v46, 1  ;;  %v454_v7 = vrot.slane %v2491_v46, 3 }
 0x250   :  { %v462_v4 = vrot.slane %v2491_v46, 5  ;;  %v466_v8 = vrot.slane %v2491_v46, 6 }
 0x251   :  { %2227 = vset.pattern.permute.xlu1 %v2341_v34  ;;  %2228 = vset.pattern.permute.xlu0 %v2342_v35  ;;  %v324_v5 = vrot.slane %v2513_v0, 3  ;;  %v320_v17 = vrot.slane %v2513_v0, 2  ;;  %v328_v19 = vrot.slane %v2513_v0, 4  ;;  %v332_v21 = vrot.slane %v2513_v0, 5 }
 0x252   :  { %629 = vperm.xlu1 %2227, %v2477_v32   ;;  %637 = vperm.xlu0 %2228, %v2477_v32   ;;  %v336_v22 = vrot.slane %v2513_v0, 6  ;;  %v340_v23 = vrot.slane %v2513_v0, 7 }
 0x256   :  { %2229 = vset.pattern.permute.xlu1 %v2343_v40  ;;  %590 = vrot.lane.b32.xlu0 %v589_v37, %s2344_s28 }
 0x257   :  { %645 = vperm.xlu1 %2229, %v2477_v32   ;;  %2230 = vset.pattern.permute.xlu0 %v2345_v41 }
 0x25a   :  { %594 = vrot.lane.b32.xlu0 %v593_v42, %s2346_s29 }
 0x25b   :  { %574 = vrot.lane.b32.xlu1 %v573_v44, %s2347_s30 }
 0x25c   :  { %2231 = vset.pattern.permute.xlu1 %v2348_v47 }
 0x25e   :  { %445 = vrot.lane.b32.xlu0 %v2491_v46, %s2349_s10  ;;  %s2374_s10 = smov 64  }
 0x25f   :  { %578 = vrot.lane.b32.xlu1 %v577_v48, %s2350_s11 }
 0x262   :  { %482 = vperm.xlu0 %2230, %v2491_v46  }
 0x263   :  { %582 = vrot.lane.b32.xlu1 %v581_v50, %s2351_s12 }
 0x266   :  { %2232 = vset.pattern.permute.xlu0 %v2352_v54 }
 0x267   :  { %502 = vperm.xlu0 %2232, %v2491_v46   ;;  %586 = vrot.lane.b32.xlu1 %v585_v52, %s2353_s13 }
 0x26b   :  { %459 = vrot.lane.b32.xlu0 %v458_v55, %s2350_s11  ;;  %598 = vrot.lane.b32.xlu1 %v597_v56, %s2354_s14 }
 0x26c   :  { %2235 = vset.pattern.permute.xlu0 %v2355_v57 }
 0x26f   :  { %471 = vrot.lane.b32.xlu0 %v470_v58, %s2344_s28  ;;  %494 = vperm.xlu1 %2231, %v2491_v46   ;;  %v452_v58 = vrot.slane %v2491_v46, 2 }
 0x273   :  { %526 = vperm.xlu0 %2235, %v2491_v46   ;;  %2233 = vset.pattern.permute.xlu1 %v2356_v59 }
 0x274   :  { %510 = vperm.xlu1 %2233, %v2491_v46  }
 0x277   :  { %2238 = vset.pattern.permute.xlu0 %v2357_v62 }
 0x278   :  { %661 = vperm.xlu0 %2238, %v2477_v32   ;;  %2234 = vset.pattern.permute.xlu1 %v2358_v63 }
 0x279   :  { %518 = vperm.xlu1 %2234, %v2491_v46  }
 0x27c   :  { %315 = vrot.lane.b32.xlu0 %v2513_v0, %s2359_s15 }
 0x27d   :  { %449 = vrot.lane.b32.xlu1 %v448_v1, %s2359_s15  ;;  %2242 = vset.pattern.permute.xlu0 %v2360_v2 }
 0x27e   :  { %2236 = vset.pattern.permute.xlu1 %v2361_v6 }
 0x280   :  { %325 = vrot.lane.b32.xlu0 %v324_v5, %s2350_s11 }
 0x281   :  { %455 = vrot.lane.b32.xlu1 %v454_v7, %s2347_s30 }
 0x284   :  { %369 = vperm.xlu0 %2242, %v2513_v0  }
 0x285   :  { %463 = vrot.lane.b32.xlu1 %v462_v4, %s2351_s12 }
 0x288   :  { %2243 = vset.pattern.permute.xlu0 %v2362_v9 }
 0x289   :  { %377 = vperm.xlu0 %2243, %v2513_v0   ;;  %467 = vrot.lane.b32.xlu1 %v466_v8, %s2353_s13 }
 0x28d   :  { %2244 = vset.pattern.permute.xlu0 %v2363_v10  ;;  %653 = vperm.xlu1 %2236, %v2477_v32  }
 0x28e   :  { %385 = vperm.xlu0 %2244, %v2513_v0  }
 0x291   :  { %2237 = vset.pattern.permute.xlu1 %v2364_v12 }
 0x292   :  { %2247 = vset.pattern.permute.xlu0 %v2365_v13  ;;  %534 = vperm.xlu1 %2237, %v2491_v46  }
 0x293   :  { %409 = vperm.xlu0 %2247, %v2513_v0  }
 0x296   :  { %2239 = vset.pattern.permute.xlu1 %v2366_v14 }
 0x297   :  { %542 = vperm.xlu1 %2239, %v2491_v46   ;;  %2249 = vset.pattern.permute.xlu0 %v2367_v15 }
 0x29b   :  { %2240 = vset.pattern.permute.xlu1 %v2367_v15 }
 0x29c   :  { %669 = vperm.xlu1 %2240, %v2477_v32  }
 0x2a0   :  { %321 = vrot.lane.b32.xlu1 %v320_v17, %s2347_s30 }
 0x2a1   :  { %2241 = vset.pattern.permute.xlu1 %v2368_v18 }
 0x2a4   :  { %357 = vperm.xlu1 %2241, %v2513_v0  }
 0x2a8   :  { %329 = vrot.lane.b32.xlu1 %v328_v19, %s2351_s12 }
 0x2a9   :  { %2245 = vset.pattern.permute.xlu1 %v2369_v20 }
 0x2ac   :  { %333 = vrot.lane.b32.xlu1 %v332_v21, %s2353_s13 }
 0x2b0   :  { %337 = vrot.lane.b32.xlu1 %v336_v22, %s2344_s28 }
 0x2b4   :  { %341 = vrot.lane.b32.xlu1 %v340_v23, %s2346_s29 }
 0x2b8   :  { %393 = vperm.xlu1 %2245, %v2513_v0  }
 0x2bc   :  { %2246 = vset.pattern.permute.xlu1 %v2370_v24 }
 0x2bd   :  { %401 = vperm.xlu1 %2246, %v2513_v0  }
 0x2c1   :  { %2248 = vset.pattern.permute.xlu1 %v2371_v25 }
 0x2c2   :  { %417 = vperm.xlu1 %2248, %v2513_v0  }
 0x2cc   :  { %v622_v26 = vpop.permute.xlu1 %621  ;;  %v610_v29 = vpop.permute.xlu0 %609 }
 0x2d1   :  { %v630_v27 = vpop.permute.xlu1 %629  ;;  %v638_v33 = vpop.permute.xlu0 %637 }
 0x2d5   :  { %v591_v35 = vpop.permute.xlu0 %590 }
 0x2d6   :  { %v2549_v28 = vpop.permute.xlu1 %645 }
 0x2d9   :  { %v595_v38 = vpop.permute.xlu0 %594 }
 0x2da   :  { %v575_v30 = vpop.permute.xlu1 %574 }
 0x2db   :  { %v601_v40 = vsel %vm244_vm11, %v2477_v32, %v575_v30 }
 0x2dd   :  { %v446_v41 = vpop.permute.xlu0 %445 }
 0x2de   :  { %v579_v31 = vpop.permute.xlu1 %578 }
 0x2df   :  { %v602_v42 = vsel %vm345_vm0, %v601_v40, %v579_v31 }
 0x2e1   :  { %v483_v47 = vpop.permute.xlu0 %482 }
 0x2e2   :  { %v583_v34 = vpop.permute.xlu1 %582 }
 0x2e3   :  { %v603_v43 = vsel %vm215_vm2, %v602_v42, %v583_v34 }
 0x2e6   :  { %v587_v36 = vpop.permute.xlu1 %586  ;;  %v503_v53 = vpop.permute.xlu0 %502 }
 0x2e7   :  { %v604_v45 = vsel %vm348_vm1, %v603_v43, %v587_v36 }
 0x2e8   :  { %v605_v48 = vsel %vm350_vm3, %v604_v45, %v591_v35 }
 0x2e9   :  { %v606_v50 = vsel %vm352_vm4, %v605_v48, %v595_v38 }
 0x2ea   :  { %v599_v37 = vpop.permute.xlu1 %598  ;;  %v460_v59 = vpop.permute.xlu0 %459 }
 0x2eb   :  { %v2562_v54 = vsel %vm354_vm5, %v606_v50, %v599_v37 }
 0x2ec   :  { %v2566_v55 = vrot.slane %v2562_v54, %v2559_v51 }
 0x2ee   :  { %v495_v39 = vpop.permute.xlu1 %494  ;;  %vm616_vm6 = vcmp.le.f32.partialorder %v610_v29, %v2566_v55  ;;  %vm624_vm7 = vcmp.le.f32.partialorder %v622_v26, %v2566_v55  ;;  %v472_v6 = vpop.permute.xlu0 %471  ;;  %vm632_vm8 = vcmp.le.f32.partialorder %v630_v27, %v2566_v55  ;;  %vm640_vm14 = vcmp.le.f32.partialorder %v638_v33, %v2566_v55 }
 0x2ef   :  { %v1913_v63 = vsel %vm616_vm6, 1.0, %v2338_v3  ;;  %v1914_v1 = vsel %vm624_vm7, 1.0, %v2338_v3  ;;  %v1915_v12 = vsel %vm632_vm8, 1.0, %v2338_v3  ;;  %v1916_v20 = vsel %vm640_vm14, 1.0, %v2338_v3 }
 0x2f0   :  { %v627_v8 = vadd.f32 %v1914_v1, %v1913_v63  ;;  %vm648_vm7 = vcmp.le.f32.partialorder %v2549_v28, %v2566_v55 }
 0x2f1   :  { %v1917_v29 = vsel %vm648_vm7, 1.0, %v2338_v3  ;;  %vm435_vm7 = vcmask 516096  }
 0x2f2   :  { %v635_v13 = vadd.f32 %v1915_v12, %v627_v8  ;;  %v527_v17 = vpop.permute.xlu0 %526 }
 0x2f3   :  { %v511_v44 = vpop.permute.xlu1 %510 }
 0x2f4   :  { %v643_v23 = vadd.f32 %v1916_v20, %v635_v13 }
 0x2f6   :  { %v651_v33 = vadd.f32 %v1917_v29, %v643_v23 }
 0x2f7   :  { %v662_v27 = vpop.permute.xlu0 %661 }
 0x2f8   :  { %v519_v49 = vpop.permute.xlu1 %518  ;;  %vm664_vm14 = vcmp.le.f32.partialorder %v662_v27, %v2566_v55 }
 0x2f9   :  { %v1919_v40 = vsel %vm664_vm14, 1.0, %v2338_v3 }
 0x2fb   :  { %v316_v50 = vpop.permute.xlu0 %315 }
 0x2fc   :  { %v450_v52 = vpop.permute.xlu1 %449 }
 0x2fd   :  { %v474_v56 = vsel %vm244_vm11, %v446_v41, %v450_v52 }
 0x2fe   :  { %v475_v60 = vsel %vm345_vm0, %v474_v56, %v452_v58 }
 0x300   :  { %v456_v57 = vpop.permute.xlu1 %455 }
 0x301   :  { %v476_v16 = vsel %vm215_vm2, %v475_v60, %v456_v57 }
 0x302   :  { %v477_v62 = vsel %vm348_vm1, %v476_v16, %v460_v59 }
 0x304   :  { %v464_v61 = vpop.permute.xlu1 %463 }
 0x305   :  { %v478_v2 = vsel %vm350_vm3, %v477_v62, %v464_v61  ;;  %v326_v61 = vpop.permute.xlu0 %325 }
 0x308   :  { %v468_v5 = vpop.permute.xlu1 %467 }
 0x309   :  { %v479_v7 = vsel %vm352_vm4, %v478_v2, %v468_v5  ;;  %v318_v5 = vrot.slane %v2513_v0, 1 }
 0x30a   :  { %v2580_v4 = vsel %vm354_vm5, %v479_v7, %v472_v6 }
 0x30b   :  { %v488_v9 = vrot.slane %v2580_v4, %v2559_v51 }
 0x30c   :  { %v654_v10 = vpop.permute.xlu1 %653 }
 0x30d   :  { %vm489_vm10 = vcmp.le.f32.partialorder %v483_v47, %v488_v9  ;;  %vm497_vm12 = vcmp.le.f32.partialorder %v495_v39, %v488_v9  ;;  %vm505_vm13 = vcmp.le.f32.partialorder %v503_v53, %v488_v9  ;;  %vm513_vm15 = vcmp.le.f32.partialorder %v511_v44, %v488_v9 }
 0x30e   :  { %v1905_v14 = vsel %vm489_vm10, 1.0, %v2338_v3  ;;  %v1906_v15 = vsel %vm497_vm12, 1.0, %v2338_v3  ;;  %v1907_v19 = vsel %vm505_vm13, 1.0, %v2338_v3  ;;  %vm521_vm6 = vcmp.le.f32.partialorder %v519_v49, %v488_v9 }
 0x30f   :  { %v500_v18 = vadd.f32 %v1906_v15, %v1905_v14  ;;  %vm656_vm8 = vcmp.le.f32.partialorder %v654_v10, %v2566_v55  ;;  %v1908_v24 = vsel %vm513_vm15, 1.0, %v2338_v3  ;;  %vm529_vm10 = vcmp.le.f32.partialorder %v527_v17, %v488_v9  ;;  %v370_v10 = vpop.permute.xlu0 %369 }
 0x310   :  { %v1909_v26 = vsel %vm521_vm6, 1.0, %v2338_v3  ;;  %v1918_v30 = vsel %vm656_vm8, 1.0, %v2338_v3  ;;  %v1910_v34 = vsel %vm529_vm10, 1.0, %v2338_v3  ;;  %vm425_vm15 = vcmask 523264  }
 0x311   :  { %v508_v21 = vadd.f32 %v1907_v19, %v500_v18  ;;  %v535_v22 = vpop.permute.xlu1 %534  ;;  %v659_v36 = vadd.f32 %v1918_v30, %v651_v33 }
 0x312   :  { %vm537_vm12 = vcmp.le.f32.partialorder %v535_v22, %v488_v9 }
 0x313   :  { %v516_v25 = vadd.f32 %v1908_v24, %v508_v21  ;;  %v1911_v37 = vsel %vm537_vm12, 1.0, %v2338_v3  ;;  %v667_v43 = vadd.f32 %v1919_v40, %v659_v36  ;;  %v378_v22 = vpop.permute.xlu0 %377 }
 0x315   :  { %v524_v31 = vadd.f32 %v1909_v26, %v516_v25 }
 0x316   :  { %v543_v35 = vpop.permute.xlu1 %542 }
 0x317   :  { %v532_v28 = vadd.f32 %v1910_v34, %v524_v31  ;;  %vm545_vm13 = vcmp.le.f32.partialorder %v543_v35, %v488_v9  ;;  %v344_v9 = vsel %vm244_vm11, %v316_v50, %v318_v5 }
 0x318   :  { %v1912_v39 = vsel %vm545_vm13, 1.0, %v2338_v3 }
 0x319   :  { %v540_v38 = vadd.f32 %v1911_v37, %v532_v28 }
 0x31b   :  { %v548_v41 = vadd.f32 %v1912_v39, %v540_v38  ;;  %v670_v42 = vpop.permute.xlu1 %669 }
 0x31c   :  { %vm672_vm6 = vcmp.le.f32.partialorder %v670_v42, %v2566_v55 }
 0x31d   :  { %v549_v44 = vmin.f32 %v548_v41, 4.0  ;;  %v1920_v45 = vsel %vm672_vm6, 1.0, %v2338_v3 }
 0x31e   :  { %v675_v47 = vadd.f32 %v1920_v45, %v667_v43 }
 0x31f   :  { %v550_v48 = vsel %vm425_vm15, %v549_v44, 0.0  ;;  %v322_v49 = vpop.permute.xlu1 %321 }
 0x320   :  { %v551_v52 = vrot.slane %v550_v48, 4  ;;  %v676_v53 = vmin.f32 %v675_v47, 4.0  ;;  %v346_v12 = vsel %vm345_vm0, %v344_v9, %v322_v49 }
 0x321   :  { %v347_v18 = vsel %vm215_vm2, %v346_v12, %v326_v61 }
 0x322   :  { %v552_v56 = vadd.f32 %v551_v52, %v550_v48  ;;  %v677_v57 = vsel %vm425_vm15, %v676_v53, 0.0 }
 0x323   :  { %v678_v58 = vrot.slane %v677_v57, 4  ;;  %v358_v59 = vpop.permute.xlu1 %357 }
 0x324   :  { %v553_v60 = vrot.slane %v552_v56, 2 }
 0x325   :  { %v679_v16 = vadd.f32 %v678_v58, %v677_v57 }
 0x326   :  { %v554_v62 = vadd.f32 %v553_v60, %v552_v56 }
 0x327   :  { %v330_v55 = vpop.permute.xlu1 %329  ;;  %v680_v63 = vrot.slane %v679_v16, 2 }
 0x328   :  { %v555_v1 = vrot.slane %v554_v62, 1  ;;  %v349_v20 = vsel %vm348_vm1, %v347_v18, %v330_v55 }
 0x329   :  { %v681_v2 = vadd.f32 %v680_v63, %v679_v16 }
 0x32a   :  { %v556_v6 = vadd.f32 %v555_v1, %v554_v62 }
 0x32b   :  { %v334_v7 = vpop.permute.xlu1 %333  ;;  %v682_v8 = vrot.slane %v681_v2, 1 }
 0x32c   :  { %vm557_vm8 = vcmp.ge.f32.partialorder %v556_v6, 16.0  ;;  %v351_v23 = vsel %vm350_vm3, %v349_v20, %v334_v7  ;;  %v2250_v20 = vld [vmem:[%s2940_s3 + $0xc0] sm:$0xff]  }
 0x32d   :  { %v558_v13 = vsel %vm557_vm8, %v2580_v4, inf  ;;  %v683_v14 = vadd.f32 %v682_v8, %v681_v2  ;;  %2020 = vmatprep.subr.bf16.mxu0 %v2250_v20  ;;  %v2281_v20 = vld [vmem:[%s2940_s3 + $0x38] sm:$0xff]  }
 0x32e   :  { %v559_v15 = vsel %vm435_vm7, %v558_v13, inf }
 0x32f   :  { %560 = vmin.xlane.f32.xlu1 %v559_v15  ;;  %v338_v17 = vpop.permute.xlu1 %337  ;;  %vm684_vm10 = vcmp.ge.f32.partialorder %v683_v14, 16.0 }
 0x330   :  { %v685_v19 = vsel %vm684_vm10, %v2562_v54, inf  ;;  %v353_v4 = vsel %vm352_vm4, %v351_v23, %v338_v17  ;;  %v386_v54 = vpop.permute.xlu0 %385 }
 0x331   :  { %v686_v21 = vsel %vm435_vm7, %v685_v19, inf }
 0x332   :  { %687 = vmin.xlane.f32.xlu0 %v686_v21  ;;  %v2251_v21 = vld [vmem:[%s2940_s3 + $0x40] sm:$0xff]  }
 0x333   :  { %v342_v24 = vpop.permute.xlu1 %341 }
 0x334   :  { %v355_v25 = vsel %vm354_vm5, %v353_v4, %v342_v24  ;;  %v410_v37 = vpop.permute.xlu0 %409  ;;  %v2254_v24 = vld [vmem:[%s2940_s3 + $0xc8] sm:$0xff]  }
 0x335   :  { %v363_v26 = vrot.slane %v355_v25, %v2559_v51 }
 0x337   :  { %vm364_vm0 = vcmp.le.f32.partialorder %v358_v59, %v363_v26  ;;  %vm372_vm12 = vcmp.le.f32.partialorder %v370_v10, %v363_v26  ;;  %vm380_vm2 = vcmp.le.f32.partialorder %v378_v22, %v363_v26  ;;  %v394_v27 = vpop.permute.xlu1 %393  ;;  %vm388_vm13 = vcmp.le.f32.partialorder %v386_v54, %v363_v26  ;;  %v2252_v22 = vld [vmem:[%s2940_s3 + $0x80] sm:$0xff]  }
 0x338   :  { %v1897_v29 = vsel %vm364_vm0, 1.0, %v2338_v3  ;;  %v1898_v30 = vsel %vm372_vm12, 1.0, %v2338_v3  ;;  %v1899_v33 = vsel %vm380_vm2, 1.0, %v2338_v3  ;;  %vm396_vm3 = vcmp.le.f32.partialorder %v394_v27, %v363_v26  ;;  %2021 = vmatpush3.bf16.msra.mxu0 %v2252_v22  ;;  %v2260_v27 = vld [vmem:[%s2940_s3 + $0x90] sm:$0xff]   ;;  %v2335_v22 = vld [vmem:[%s2938_s0] sm:$0xff] }
 0x339   :  { %v375_v31 = vadd.f32 %v1898_v30, %v1897_v29  ;;  %v1900_v35 = vsel %vm388_vm13, 1.0, %v2338_v3  ;;  %v1901_v38 = vsel %vm396_vm3, 1.0, %v2338_v3  ;;  %vm412_vm5 = vcmp.le.f32.partialorder %v410_v37, %v363_v26  ;;  %2022 = vmatprep.subr.bf16.mxu0 %v2254_v24  ;;  %v2262_v29 = vld [vmem:[%s2940_s3 + $0xd8] sm:$0xff]   ;;  %v2274_v37 = vld [vmem:[%s2940_s3 + $0xf0] sm:$0xff]   ;;  %v2336_v24 = vld [vmem:[%s2938_s0 + $0x28] sm:$0xff] }
 0x33a   :  { %v1903_v43 = vsel %vm412_vm5, 1.0, %v2338_v3  ;;  %vm1727_vm5 = vcmask 15360  }
 0x33b   :  { %v383_v34 = vadd.f32 %v1899_v33, %v375_v31  ;;  %v2264_v31 = vld [vmem:[%s2940_s3 + $0x98] sm:$0xff]  }
 0x33c   :  { %v402_v28 = vpop.permute.xlu1 %401 }
 0x33d   :  { %v391_v36 = vadd.f32 %v1900_v35, %v383_v34  ;;  %vm404_vm4 = vcmp.le.f32.partialorder %v402_v28, %v363_v26  ;;  %v2266_v34 = vld [vmem:[%s2940_s3 + $0xe0] sm:$0xff]   ;;  %v2270_v28 = vld [vmem:[%s2940_s3 + $0xe8] sm:$0xff]  }
 0x33e   :  { %v1902_v40 = vsel %vm404_vm4, 1.0, %v2338_v3  ;;  %v2268_v35 = vld [vmem:[%s2940_s3 + $0xa0] sm:$0xff]  }
 0x33f   :  { %v399_v39 = vadd.f32 %v1901_v38, %v391_v36  ;;  %v2272_v36 = vld [vmem:[%s2940_s3 + $0xa8] sm:$0xff]   ;;  %v2276_v38 = vld [vmem:[%s2940_s3 + $0xb0] sm:$0xff]  }
 0x341   :  { %v407_v41 = vadd.f32 %v1902_v40, %v399_v39  ;;  %v418_v42 = vpop.permute.xlu1 %417  ;;  %v2278_v39 = vld [vmem:[%s2940_s3 + $0xf8] sm:$0xff]  }
 0x342   :  { %vm420_vm14 = vcmp.le.f32.partialorder %v418_v42, %v363_v26  ;;  %v2258_v26 = vld [vmem:[%s2940_s3 + $0xd0] sm:$0xff]   ;;  %v2280_v40 = vld [vmem:[%s2940_s3 + $0xb8] sm:$0xff]  }
 0x343   :  { %v415_v44 = vadd.f32 %v1903_v43, %v407_v41  ;;  %v1904_v45 = vsel %vm420_vm14, 1.0, %v2338_v3  ;;  %v2330_v41 = vld [vmem:[%s2938_s0 + $0x18] sm:$0xff]  ;;  %v2282_v43 = vld [vmem:[%s2940_s3 + $0x1c0] sm:$0xff]   ;;  %vm1734_vm14 = vcmask 23552  }
 0x344   :  { %v810_v42 = vpack.c.bf16 %v2330_v41, %v2330_v41 }
 0x345   :  { %v423_v47 = vadd.f32 %v1904_v45, %v415_v44  ;;  %v2331_v44 = vld [vmem:[%s2938_s0 + $0x10] sm:$0xff] }
 0x346   :  { %1399 = vmatprep.mubr.bf16.mxu0 %v810_v42  ;;  %v809_v45 = vpack.c.bf16 %v2331_v44, %v2331_v44 }
 0x347   :  { %v424_v48 = vmin.f32 %v423_v47, 4.0  ;;  %v2284_v47 = vld [vmem:[%s2940_s3 + $0x180] sm:$0xff]  }
 0x349   :  { %v426_v49 = vsel %vm425_vm15, %v424_v48, 0.0  ;;  %v2286_v48 = vld [vmem:[%s2940_s3 + $0x1c8] sm:$0xff]  }
 0x34a   :  { %v427_v50 = vrot.slane %v426_v49, 4 }
 0x34c   :  { %v428_v52 = vadd.f32 %v427_v50, %v426_v49  ;;  %v2288_v49 = vld [vmem:[%s2940_s3 + $0x188] sm:$0xff]   ;;  %v2290_v50 = vld [vmem:[%s2940_s3 + $0x1d0] sm:$0xff]  }
 0x34e   :  { %v429_v53 = vrot.slane %v428_v52, 2 }
 0x350   :  { %v430_v56 = vadd.f32 %v429_v53, %v428_v52  ;;  %v2292_v52 = vld [vmem:[%s2940_s3 + $0x190] sm:$0xff]   ;;  %v2294_v53 = vld [vmem:[%s2940_s3 + $0x1d8] sm:$0xff]  }
 0x352   :  { %v431_v57 = vrot.slane %v430_v56, 1 }
 0x354   :  { %v432_v58 = vadd.f32 %v431_v57, %v430_v56  ;;  %v2296_v56 = vld [vmem:[%s2940_s3 + $0x198] sm:$0xff]   ;;  %v2298_v57 = vld [vmem:[%s2940_s3 + $0x1e0] sm:$0xff]  }
 0x356   :  { %vm433_vm6 = vcmp.ge.f32.partialorder %v432_v58, 16.0  ;;  %v2300_v58 = vld [vmem:[%s2940_s3 + $0x1a0] sm:$0xff]  }
 0x357   :  { %v434_v59 = vsel %vm433_vm6, %v355_v25, inf  ;;  %v2256_v25 = vld [vmem:[%s2940_s3 + $0x88] sm:$0xff]  }
 0x358   :  { %v436_v60 = vsel %vm435_vm7, %v434_v59, inf  ;;  %2023 = vmatpush3.bf16.msra.mxu0 %v2256_v25  ;;  %v2302_v59 = vld [vmem:[%s2940_s3 + $0x1e8] sm:$0xff]   ;;  %v812_v25 = vpack.c.bf16 %v2336_v24, %v2336_v24 }
 0x359   :  { %437 = vmin.xlane.f32.xlu0 %v436_v60  ;;  %2024 = vmatprep.subr.bf16.mxu0 %v2258_v26  ;;  %v2304_v60 = vld [vmem:[%s2940_s3 + $0x1a8] sm:$0xff]  }
 0x35a   :  { %v2287_v26 = vld [vmem:[%s2940_s3 + $0x148] sm:$0xff]  }
 0x35c   :  { %2025 = vmatpush3.bf16.msra.mxu0 %v2260_v27  ;;  %v2289_v27 = vld [vmem:[%s2940_s3 + $0x108] sm:$0xff]  }
 0x35d   :  { %2026 = vmatprep.subr.bf16.mxu0 %v2262_v29  ;;  %v2293_v29 = vld [vmem:[%s2940_s3 + $0x110] sm:$0xff]  }
 0x360   :  { %2027 = vmatpush3.bf16.msra.mxu0 %v2264_v31  ;;  %v2297_v31 = vld [vmem:[%s2940_s3 + $0x118] sm:$0xff]  }
 0x361   :  { %2028 = vmatprep.subr.bf16.mxu0 %v2266_v34  ;;  %v2301_v34 = vld [vmem:[%s2940_s3 + $0x120] sm:$0xff]  }
 0x364   :  { %2029 = vmatpush3.bf16.msra.mxu0 %v2268_v35  ;;  %v2303_v35 = vld [vmem:[%s2940_s3 + $0x168] sm:$0xff]  }
 0x365   :  { %2030 = vmatprep.subr.bf16.mxu0 %v2270_v28  ;;  %v2305_v28 = vld [vmem:[%s2940_s3 + $0x128] sm:$0xff]  }
 0x368   :  { %2031 = vmatpush3.bf16.msra.mxu0 %v2272_v36  ;;  %v2307_v36 = vld [vmem:[%s2940_s3 + $0x170] sm:$0xff]  }
 0x369   :  { %2032 = vmatprep.subr.bf16.mxu0 %v2274_v37  ;;  %v2309_v37 = vld [vmem:[%s2940_s3 + $0x130] sm:$0xff]  }
 0x36c   :  { %2033 = vmatpush3.bf16.msra.mxu0 %v2276_v38  ;;  %v2311_v38 = vld [vmem:[%s2940_s3 + $0x178] sm:$0xff]  }
 0x36d   :  { %2034 = vmatprep.subr.bf16.mxu0 %v2278_v39  ;;  %v2313_v39 = vld [vmem:[%s2940_s3 + $0x138] sm:$0xff]  }
 0x370   :  { %2035 = vmatpush3.bf16.msra.mxu0 %v2280_v40  ;;  %v2337_v40 = vld [vmem:[%s2938_s0 + $0x20] sm:$0xff] }
 0x371   :  { %2064 = vmatprep.subr.bf16.mxu0 %v2282_v43  ;;  %v811_v41 = vpack.c.bf16 %v2337_v40, %v2337_v40 }
 0x373   :  { %1400 = vmatmul.mubr.bf16.vlgmr.msra.gmra.mrb[8].mxu0 %v809_v45 }
 0x374   :  { %2065 = vmatpush3.bf16.msra.mxu0 %v2284_v47 }
 0x375   :  { %2066 = vmatprep.subr.bf16.mxu0 %v2286_v48 }
 0x378   :  { %2067 = vmatpush3.bf16.msra.mxu0 %v2288_v49 }
 0x379   :  { %2068 = vmatprep.subr.bf16.mxu0 %v2290_v50 }
 0x37c   :  { %2069 = vmatpush3.bf16.msra.mxu0 %v2292_v52 }
 0x37d   :  { %2070 = vmatprep.subr.bf16.mxu0 %v2294_v53 }
 0x380   :  { %2071 = vmatpush3.bf16.msra.mxu0 %v2296_v56 }
 0x381   :  { %2072 = vmatprep.subr.bf16.mxu0 %v2298_v57 }
 0x384   :  { %2073 = vmatpush3.bf16.msra.mxu0 %v2300_v58 }
 0x385   :  { %2074 = vmatprep.subr.bf16.mxu0 %v2302_v59 }
 0x388   :  { %2075 = vmatpush3.bf16.msra.mxu0 %v2304_v60 }
 0x3bc   :  { %v561_v16 = vpop.xlane.xlu1 %560 }
 0x3bd   :  { %v565_v61 = vrot.slane %v561_v16, %v2559_v51  ;;  %v2306_v16 = vld [vmem:[%s2940_s3 + $0x1f0] sm:$0xff]  }
 0x3be   :  { %2076 = vmatprep.subr.bf16.mxu0 %v2306_v16 }
 0x3bf   :  { %vm566_vm8 = vcmp.lt.f32.partialorder %v2491_v46, %v565_v61  ;;  %v688_v62 = vpop.xlane.xlu0 %687  ;;  %v2308_v61 = vld [vmem:[%s2940_s3 + $0x1b0] sm:$0xff]  }
 0x3c0   :  { %v692_v55 = vrot.slane %v688_v62, %v2559_v51  ;;  %v567_v63 = vsel %vm566_vm8, 1, %v2340_v11  ;;  %v2310_v62 = vld [vmem:[%s2940_s3 + $0x1f8] sm:$0xff]   ;;  %2077 = vmatpush3.bf16.msra.mxu0 %v2308_v61 }
 0x3c1   :  { %568 = vrot.lane.b32.xlu0 %v567_v63, %s2359_s15  ;;  %2078 = vmatprep.subr.bf16.mxu0 %v2310_v62  ;;  %v2332_v63 = vld [vmem:[%s2938_s0 + $0x38] sm:$0xff] }
 0x3c2   :  { %vm693_vm10 = vcmp.lt.f32.partialorder %v2477_v32, %v692_v55  ;;  %v2312_v55 = vld [vmem:[%s2940_s3 + $0x1b8] sm:$0xff]  }
 0x3c3   :  { %v694_v1 = vsel %vm693_vm10, 1, %v2340_v11 }
 0x3c4   :  { %695 = vrot.lane.b32.xlu1 %v694_v1, %s2347_s30  ;;  %v814_v1 = vpack.c.bf16 %v2332_v63, %v2332_v63  ;;  %2079 = vmatpush3.bf16.msra.mxu0 %v2312_v55  ;;  %v2373_v55 = vmov 0.0|0.0  }
 0x3c5   :  { %2176 = vmatprep.subr.bf16.mxu0 %v2373_v55 }
 0x3c6   :  { %1479 = vmatprep.mubr.bf16.mxu0 %v814_v1 }
 0x3e6   :  { %v438_v2 = vpop.xlane.xlu0 %437 }
 0x3e7   :  { %v442_v5 = vrot.slane %v438_v2, %v2559_v51  ;;  %v2333_v2 = vld [vmem:[%s2938_s0 + $0x30] sm:$0xff] }
 0x3e9   :  { %vm443_vm0 = vcmp.lt.f32.partialorder %v2513_v0, %v442_v5  ;;  %v813_v5 = vpack.c.bf16 %v2333_v2, %v2333_v2 }
 0x3eb   :  { %1480 = vmatmul.mubr.bf16.vlgmr.msra.gmra.mrb[12].mxu0 %v813_v5 }
 0x433   :  { %v569_v6 = vpop.permute.xlu0 %568 }
 0x434   :  { %vm570_vm7 = vcmp.ne.s32.totalorder %v569_v6, 0  ;;  %v2253_v6 = vld [vmem:[%s2940_s3] sm:$0xff]  }
 0x435   :  { %vm571_vm12 = vmor %vm443_vm0, %vm570_vm7 }
 0x436   :  { %v696_v46 = vpop.permute.xlu1 %695 }
 0x437   :  { %vm697_vm2 = vcmp.ne.s32.totalorder %v696_v46, 0  ;;  %v2334_v46 = vld [vmem:[%s2938_s0 + $0x8] sm:$0xff] }
 0x438   :  { %vm698_vm13 = vmor %vm571_vm12, %vm697_vm2 }
 0x439   :  { %v1921_v7 = vsel %vm698_vm13, 1.0, %v2338_v3 }
 0x43a   :  { %v708_v8 = vsel %vm271_vm9, %v1921_v7, 0.0  ;;  %702 = vrot.lane.b32.xlu1 %v1921_v7, %s2359_s15  ;;  %vm2372_vm9 = vmmov 0  }
 0x43b   :  { %v709_v11 = vrot.slane %v708_v8, 4  ;;  %2108 = vmatprep.mubr.msk.f32.mxu1 %vm2372_vm9, %v2338_v3  ;;  %2153 = vmatprep.mubr.msk.f32.mxu0 %vm2372_vm9, %v2338_v3 }
 0x43d   :  { %v710_v32 = vadd.f32 %v709_v11, %v708_v8  ;;  %v2255_v8 = vld [vmem:[%s2940_s3 + $0x48] sm:$0xff]  }
 0x43f   :  { %v711_v9 = vrot.slane %v710_v32, 2 }
 0x441   :  { %v712_v10 = vadd.f32 %v711_v9, %v710_v32  ;;  %v2257_v32 = vld [vmem:[%s2940_s3 + $0x8] sm:$0xff]   ;;  %v2259_v9 = vld [vmem:[%s2940_s3 + $0x50] sm:$0xff]  }
 0x443   :  { %v713_v12 = vrot.slane %v712_v10, 1 }
 0x445   :  { %v714_v51 = vadd.f32 %v713_v12, %v712_v10  ;;  %v2261_v10 = vld [vmem:[%s2940_s3 + $0x10] sm:$0xff]   ;;  %v2263_v12 = vld [vmem:[%s2940_s3 + $0x58] sm:$0xff]  }
 0x446   :  { %v2036_v42 = vpop.f32.mrb[8].mxu0 }
 0x447   :  { %v721_v13 = vmax.f32 %v714_v51, 1.0  ;;  %vm720_vm3 = vcmp.gt.f32.partialorder %v714_v51, 0.0  ;;  %v2265_v51 = vld [vmem:[%s2940_s3 + $0x18] sm:$0xff]   ;;  %v2037_v43 = vpop.f32.mrb[9].mxu0 }
 0x448   :  { %v2038_v44 = vadd.f32 %v2037_v43, %v2036_v42  ;;  %v2039_v45 = vpop.f32.mrb[10].mxu0 }
 0x449   :  { %2326 = vrcp.f32 %v721_v13  ;;  %v2267_v13 = vld [vmem:[%s2940_s3 + $0x60] sm:$0xff]   ;;  %v2040_v47 = vpop.f32.mrb[11].mxu0 }
 0x453   :  { %v2327_v14 = vpop.eup %2326 }
 0x454   :  { %v724_v0 = vsel %vm720_vm3, %v2327_v14, 0.0  ;;  %v2269_v14 = vld [vmem:[%s2940_s3 + $0x20] sm:$0xff]  }
 0x455   :  { %v726_v15 = vmul.f32 %v1921_v7, %v724_v0  ;;  %v2271_v0 = vld [vmem:[%s2940_s3 + $0x68] sm:$0xff]  }
 0x457   :  { %731 = vrot.lane.b32.xlu0 %v726_v15, %s2359_s15  ;;  %v2273_v15 = vld [vmem:[%s2940_s3 + $0x28] sm:$0xff]  }
 0x4ac   :  { %v703_v17 = vpop.permute.xlu1 %702 }
 0x4ad   :  { %v705_v18 = vsel %vm244_vm11, %v703_v17, 0.0  ;;  %v2275_v17 = vld [vmem:[%s2940_s3 + $0x70] sm:$0xff]  }
 0x4ae   :  { %706 = vadd.xlane.f32.xlu1 %v705_v18  ;;  %v2277_v18 = vld [vmem:[%s2940_s3 + $0x30] sm:$0xff]  }
 0x4be   :  { %v2080_v48 = vpop.f32.mrb[12].mxu0 }
 0x4bf   :  { %v2081_v49 = vpop.f32.mrb[13].mxu0 }
 0x4c0   :  { %v2082_v50 = vadd.f32 %v2081_v49, %v2080_v48  ;;  %v2083_v52 = vpop.f32.mrb[14].mxu0 }
 0x4c1   :  { %v2084_v53 = vpop.f32.mrb[15].mxu0 }
 0x4c9   :  { %v732_v19 = vpop.permute.xlu0 %731 }
 0x4ca   :  { %2107 = vmatpush3.xpose.msk.msra.mxu1 %vm244_vm11, %v732_v19  ;;  %v2279_v19 = vld [vmem:[%s2940_s3 + $0x78] sm:$0xff]  }
 0x4cb   :  { %1998 = vmatprep.subr.bf16.mxu1 %v2251_v21  ;;  %v2283_v21 = vld [vmem:[%s2940_s3 + $0x140] sm:$0xff]  }
 0x53b   :  { %v707_v23 = vpop.xlane.xlu1 %706 }
 0x53c   :  { %v716_v4 = vmax.f32 %v707_v23, 1.0  ;;  %vm715_vm4 = vcmp.gt.f32.partialorder %v707_v23, 0.0  ;;  %v807_v23 = vpack.c.bf16 %v2335_v22, %v2335_v22  ;;  %v1729_v22 = vld [vmem:[%s2943_s7] sm:$0xff] }
 0x53e   :  { %2328 = vrcp.f32 %v716_v4  ;;  %v2285_v4 = vld [vmem:[%s2940_s3 + $0x100] sm:$0xff]  }
 0x548   :  { %v2329_v54 = vpop.eup %2328 }
 0x549   :  { %v719_v30 = vsel %vm715_vm4, %v2329_v54, 0.0  ;;  %v2291_v54 = vld [vmem:[%s2940_s3 + $0x150] sm:$0xff]  }
 0x54a   :  { %v725_v33 = vmul.f32 %v1921_v7, %v719_v30  ;;  %v808_v7 = vpack.c.bf16 %v2334_v46, %v2334_v46  ;;  %v2295_v30 = vld [vmem:[%s2940_s3 + $0x158] sm:$0xff]  }
 0x54c   :  { %728 = vrot.lane.b32.xlu0 %v725_v33, %s2359_s15  ;;  %v2299_v33 = vld [vmem:[%s2940_s3 + $0x160] sm:$0xff]  }
 0x5be   :  { %v729_v11 = vpop.permute.xlu0 %728 }
 0x5bf   :  { %2109 = vmatmul.mubr.msk.f32.vlgmr.msra.gmra.mrb[0].mxu1 %vm244_vm11, %v729_v11  ;;  %v1569_v11 = vld [vmem:[%s2942_s5 + $0x8] sm:$0xff] }
 0x5c0   :  { %1999 = vmatpush3.bf16.msra.mxu1 %v2253_v6  ;;  %1359 = vmatprep.mubr.bf16.mxu1 %v808_v7  ;;  %v1988_v7 = vld [vmem:[%s2941_s4] ss:$0 sm:$0xff] }
 0x5c1   :  { %2000 = vmatprep.subr.bf16.mxu1 %v2255_v8  ;;  %v1568_v8 = vld [vmem:[%s2942_s5] sm:$0xff] }
 0x5c4   :  { %2001 = vmatpush3.bf16.msra.mxu1 %v2257_v32 }
 0x5c5   :  { %2002 = vmatprep.subr.bf16.mxu1 %v2259_v9 }
 0x5c8   :  { %2003 = vmatpush3.bf16.msra.mxu1 %v2261_v10  ;;  %v2165_v10 = vpack.c.bf16 %v1569_v11, %v1568_v8 }
 0x5c9   :  { %2004 = vmatprep.subr.bf16.mxu1 %v2263_v12  ;;  %v1570_v12 = vld [vmem:[%s2942_s5 + $0x10] sm:$0xff] }
 0x5cc   :  { %2005 = vmatpush3.bf16.msra.mxu1 %v2265_v51  ;;  %v1571_v51 = vld [vmem:[%s2942_s5 + $0x18] sm:$0xff] }
 0x5cd   :  { %2006 = vmatprep.subr.bf16.mxu1 %v2267_v13  ;;  %v2168_v13 = vpack.c.bf16 %v1571_v51, %v1570_v12 }
 0x5d0   :  { %2007 = vmatpush3.bf16.msra.mxu1 %v2269_v14  ;;  %v1572_v14 = vld [vmem:[%s2942_s5 + $0x20] sm:$0xff] }
 0x5d1   :  { %2008 = vmatprep.subr.bf16.mxu1 %v2271_v0  ;;  %v1573_v0 = vld [vmem:[%s2942_s5 + $0x28] sm:$0xff] }
 0x5d4   :  { %2009 = vmatpush3.bf16.msra.mxu1 %v2273_v15  ;;  %v2171_v15 = vpack.c.bf16 %v1573_v0, %v1572_v14 }
 0x5d5   :  { %2010 = vmatprep.subr.bf16.mxu1 %v2275_v17  ;;  %v1574_v17 = vld [vmem:[%s2942_s5 + $0x30] sm:$0xff] }
 0x5d8   :  { %2011 = vmatpush3.bf16.msra.mxu1 %v2277_v18  ;;  %v1575_v18 = vld [vmem:[%s2942_s5 + $0x38] sm:$0xff] }
 0x5d9   :  { %2012 = vmatprep.subr.bf16.mxu1 %v2279_v19  ;;  %v2174_v19 = vpack.c.bf16 %v1575_v18, %v1574_v17 }
 0x5dc   :  { %2013 = vmatpush3.bf16.msra.mxu1 %v2281_v20 }
 0x5dd   :  { %2042 = vmatprep.subr.bf16.mxu1 %v2283_v21 }
 0x5df   :  { %1360 = vmatmul.mubr.bf16.vlgmr.msra.gmra.mrb[4].mxu1 %v807_v23  ;;  %v1730_v23 = vld [vmem:[%s2943_s7 + $0x8] sm:$0xff] }
 0x5e0   :  { %2043 = vmatpush3.bf16.msra.mxu1 %v2285_v4  ;;  %1439 = vmatprep.mubr.bf16.mxu1 %v812_v25  ;;  %v1731_v4 = vld [vmem:[%s2943_s7 + $0x10] sm:$0xff]  ;;  %v2177_v24 = vpack.c.bf16 %v1730_v23, %v1729_v22  ;;  %v1732_v25 = vld [vmem:[%s2943_s7 + $0x18] sm:$0xff] }
 0x5e1   :  { %2044 = vmatprep.subr.bf16.mxu1 %v2287_v26  ;;  %v2180_v26 = vpack.c.bf16 %v1732_v25, %v1731_v4 }
 0x5e2   :  { %2178 = vmatpush3.bf16.msra.mxu0 %v2177_v24 }
 0x5e3   :  { %2179 = vmatprep.subr.bf16.mxu0 %v2373_v55 }
 0x5e4   :  { %2045 = vmatpush3.bf16.msra.mxu1 %v2289_v27  ;;  %v1990_v27 = vld [vmem:[%s2944_s6] ss:$0 sm:$0xff] }
 0x5e5   :  { %2046 = vmatprep.subr.bf16.mxu1 %v2291_v54 }
 0x5e6   :  { %2181 = vmatpush3.bf16.msra.mxu0 %v2180_v26 }
 0x5e8   :  { %2047 = vmatpush3.bf16.msra.mxu1 %v2293_v29 }
 0x5e9   :  { %2048 = vmatprep.subr.bf16.mxu1 %v2295_v30 }
 0x5ec   :  { %2049 = vmatpush3.bf16.msra.mxu1 %v2297_v31  ;;  %v1733_v31 = vld [vmem:[%s2945_s8] sm:$0x7] }
 0x5ed   :  { %2050 = vmatprep.subr.bf16.mxu1 %v2299_v33  ;;  %v1726_v33 = vld [vmem:[%s2946_s2] sm:$0xff] }
 0x5f0   :  { %2051 = vmatpush3.bf16.msra.mxu1 %v2301_v34  ;;  %v1728_v34 = vsel %vm1727_vm5, %v1726_v33, 1.0 }
 0x5f1   :  { %2052 = vmatprep.subr.bf16.mxu1 %v2303_v35 }
 0x5f4   :  { %2053 = vmatpush3.bf16.msra.mxu1 %v2305_v28 }
 0x5f5   :  { %2054 = vmatprep.subr.bf16.mxu1 %v2307_v36 }
 0x5f8   :  { %2055 = vmatpush3.bf16.msra.mxu1 %v2309_v37 }
 0x5f9   :  { %2056 = vmatprep.subr.bf16.mxu1 %v2311_v38 }
 0x5fc   :  { %2057 = vmatpush3.bf16.msra.mxu1 %v2313_v39 }
 0x5fd   :  { %2111 = vmatprep.subr.mxu1 %v2338_v3 }
 0x5ff   :  { %1440 = vmatmul.mubr.bf16.vlgmr.msra.gmra.mrb[8].mxu1 %v811_v41 }
 0x600   :  { %2113 = vmatprep.mubr.msk.f32.mxu1 %vm2372_vm9, %v2338_v3 }
 0x692   :  { %v2871_v56 = vpop.f32.mrb[0].mxu1 }
 0x693   :  { %v2110_v57 = vpop.f32.mrb[1].mxu1 }
 0x6b2   :  { %v2014_v58 = vpop.f32.mrb[4].mxu1 }
 0x6b3   :  { %v2015_v59 = vpop.f32.mrb[5].mxu1 }
 0x6b4   :  { %v2016_v60 = vadd.f32 %v2015_v59, %v2014_v58  ;;  %v2017_v16 = vpop.f32.mrb[6].mxu1 }
 0x6b5   :  { %v2018_v61 = vpop.f32.mrb[7].mxu1 }
 0x6b6   :  { %v1402_v62 = vadd.f32 %v2038_v44, %v2016_v60 }
 0x6d2   :  { %v2058_v63 = vpop.f32.mrb[8].mxu1 }
 0x6d3   :  { %v2059_v1 = vpop.f32.mrb[9].mxu1 }
 0x6d4   :  { %v2060_v2 = vadd.f32 %v2059_v1, %v2058_v63  ;;  %v2061_v5 = vpop.f32.mrb[10].mxu1 }
 0x6d5   :  { %v2062_v6 = vpop.f32.mrb[11].mxu1 }
 0x6d6   :  { %v1442_v46 = vadd.f32 %v2060_v2, %v1402_v62 }
 0x6d8   :  { %v1482_v32 = vadd.f32 %v2082_v50, %v1442_v46 }
 0x6da   :  { %1886 = vrot.lane.b32.xlu0 %v1482_v32, %s2374_s10  ;;  %v1494_v9 = vadd.f32 %v1988_v7, %v1482_v32 }
 0x6dc   :  { %2112 = vmatpush3.msra.mxu1 %v1494_v9 }
 0x6dd   :  { %2114 = vmatmul.mubr.msk.f32.vlgmr.msra.gmra.mrb[2].mxu1 %vm244_vm11, %v2871_v56  ;;  %2164 = vmatprep.subr.bf16.mxu1 %v2373_v55 }
 0x6de   :  { %2166 = vmatpush3.bf16.msra.mxu1 %v2165_v10  ;;  %2132 = vmatprep.mubr.msk.f32.mxu1 %vm2372_vm9, %v2338_v3 }
 0x6df   :  { %2167 = vmatprep.subr.bf16.mxu1 %v2373_v55 }
 0x6e2   :  { %2169 = vmatpush3.bf16.msra.mxu1 %v2168_v13 }
 0x6e3   :  { %2170 = vmatprep.subr.bf16.mxu1 %v2373_v55 }
 0x6e6   :  { %2172 = vmatpush3.bf16.msra.mxu1 %v2171_v15 }
 0x6e7   :  { %2173 = vmatprep.subr.bf16.mxu1 %v2373_v55 }
 0x6ea   :  { %2175 = vmatpush3.bf16.msra.mxu1 %v2174_v19 }
 0x6eb   :  { %2135 = vmatprep.subr.mxu1 %v2338_v3 }
 0x74c   :  { %v1887_v37 = vpop.permute.xlu0 %1886 }
 0x7b0   :  { %v1564_v20 = vpop.f32.mrb[2].mxu1 }
 0x7b1   :  { %v2115_v21 = vpop.f32.mrb[3].mxu1  ;;  %2133 = vmatmul.mubr.msk.f32.vlgmr.msra.gmra.mrb[12].mxu1 %vm425_vm15, %v1564_v20  ;;  %vm1738_vm15 = vcmask 1042432  }
 0x7b2   :  { %2137 = vmatprep.mubr.msk.f32.mxu1 %vm2372_vm9, %v2338_v3 }
 0x884   :  { %v1652_v54 = vpop.f32.mrb[12].mxu1 }
 0x885   :  { %v1653_v29 = vadd.f32 %v1990_v27, %v1652_v54  ;;  %v2134_v30 = vpop.f32.mrb[13].mxu1 }
 0x887   :  { %2136 = vmatpush3.msra.mxu1 %v1653_v29 }
 0x888   :  { %2138 = vmatmul.mubr.msk.f32.vlgmr.msra.gmra.mrb[14].mxu1 %vm244_vm11, %v2871_v56  ;;  %2140 = vmatprep.subr.mxu1 %v2338_v3  ;;  %vm1889_vm11 = vcmask 7168  }
 0x889   :  { %2142 = vmatprep.mubr.msk.f32.mxu1 %vm2372_vm9, %v2338_v3  ;;  %2141 = vmatpush3.msk.msra.mxu1 %vm1738_vm15, %v1733_v31  ;;  %v1890_v41 = vsel %vm1889_vm11, %v1887_v37, 0.0 }
 0x88c   :  { %2143 = vmatmul.mubr.msk.f32.vlgmr.msra.gmra.mrb[16].mxu1 %vm1734_vm14, %v1728_v34 }
 0x95b   :  { %v1722_v35 = vpop.f32.mrb[14].mxu1 }
 0x95c   :  { %v2139_v28 = vpop.f32.mrb[15].mxu1  ;;  %2154 = vmatmul.mubr.msk.f32.vlgmr.msra.gmra.mrb[6].mxu0 %vm348_vm1, %v1722_v35 }
 0x95f   :  { %v1808_v36 = vpop.f32.mrb[16].mxu1 }
 0x960   :  { %v2144_v3 = vpop.f32.mrb[17].mxu1 }
 0xa2f   :  { %v1881_v38 = vpop.f32.mrb[6].mxu0 }
 0xa30   :  { %v1882_v39 = vadd.f32 %v1881_v38, %v1808_v36  ;;  %v2155_v40 = vpop.f32.mrb[7].mxu0 }
 0xa32   :  { %v1891_v42 = vadd.f32 %v1890_v41, %v1882_v39 }
 0xa34   :  { %1892 = vst [vmem:[%s2947_s9] sm:$0xff] %v1891_v42 }

</bundles_post_ra>
